<compile_context>
chip_gen: v7x
topology: tpu7x:2x2x1
jax: 0.10.0
libtpu: 0.0.40
codegen_flags: <defaults>
</compile_context>

<pallas_src>
import functools
import math

import jax
import jax.numpy as jnp
from jax.experimental import pallas as pl
from jax.experimental.pallas import tpu as pltpu

_VMEM_LIMIT = 48 * 1024 * 1024  # safe on v5e/v6e (128 MiB) and v7x (64 MiB)


# ------------------------------ helpers ---------------------------------------

def _pick_tile(dim, want, align):
    """Largest tile <= want that divides dim and is a multiple of align (or dim itself)."""
    if dim <= want:
        return dim
    t = (want // align) * align
    while t >= align:
        if dim % t == 0:
            return t
        t -= align
    return dim


def _gelu(y):
    # TODO(synk): HF ProtBert (hidden_act='gelu') uses the exact erf GELU; tanh
    # approximation used here for a guaranteed-Mosaic-safe lowering (small drift).
    c = math.sqrt(2.0 / math.pi)
    return 0.5 * y * (1.0 + jnp.tanh(c * (y + 0.044715 * y * y * y)))


# ------------------------------ dense (tiled) ----------------------------------

def _dense_kernel(x_ref, w_ref, b_ref, o_ref, acc_ref, *, activation):
    """Accumulate x @ w over the K grid axis; bias + activation in the epilogue."""
    k = pl.program_id(2)

    @pl.when(k == 0)
    def _():
        acc_ref[...] = jnp.zeros_like(acc_ref)

    acc_ref[...] += jnp.dot(x_ref[...], w_ref[...], preferred_element_type=jnp.float32)

    @pl.when(k == pl.num_programs(2) - 1)
    def _():
        y = acc_ref[...] + b_ref[...]
        if activation == "gelu":
            y = _gelu(y)
        o_ref[...] = y.astype(o_ref.dtype)


def dense(x, w, b, *, activation=None, out_dtype=jnp.bfloat16, tm=256, tn=512, tk=512):
    """o = act(x @ w + b).  x:[M,K] bf16, w:[K,N] bf16, b:[N] f32."""
    M, K = x.shape
    N = w.shape[1]
    tm = _pick_tile(M, tm, 8)
    tn = _pick_tile(N, tn, 128)
    tk = _pick_tile(K, tk, 128)
    grid = (M // tm, N // tn, K // tk)
    return pl.pallas_call(
        functools.partial(_dense_kernel, activation=activation),
        grid=grid,
        in_specs=[
            pl.BlockSpec((tm, tk), lambda i, j, k: (i, k)),
            pl.BlockSpec((tk, tn), lambda i, j, k: (k, j)),
            pl.BlockSpec((1, tn), lambda i, j, k: (0, j)),
        ],
        out_specs=pl.BlockSpec((tm, tn), lambda i, j, k: (i, j)),
        out_shape=jax.ShapeDtypeStruct((M, N), out_dtype),
        scratch_shapes=[pltpu.VMEM((tm, tn), jnp.float32)],
        compiler_params=pltpu.CompilerParams(
            dimension_semantics=("parallel", "parallel", "arbitrary"),
            vmem_limit_bytes=_VMEM_LIMIT),
    )(x, w, b.reshape(1, N).astype(jnp.float32))


# -------------------- dense + residual-add + LayerNorm (fused) -----------------

def _dense_ln_kernel(x_ref, w_ref, b_ref, r_ref, g_ref, bb_ref, o_ref, acc_ref, *, eps):
    """o = LayerNorm(x @ w + b + residual) * gamma + beta.  Full N per block (LN needs it)."""
    k = pl.program_id(1)

    @pl.when(k == 0)
    def _():
        acc_ref[...] = jnp.zeros_like(acc_ref)

    acc_ref[...] += jnp.dot(x_ref[...], w_ref[...], preferred_element_type=jnp.float32)

    @pl.when(k == pl.num_programs(1) - 1)
    def _():
        y = acc_ref[...] + b_ref[...] + r_ref[...].astype(jnp.float32)
        mu = jnp.mean(y, axis=-1, keepdims=True)
        var = jnp.mean(jnp.square(y - mu), axis=-1, keepdims=True)
        yn = (y - mu) * jax.lax.rsqrt(var + eps)
        o_ref[...] = (yn * g_ref[...] + bb_ref[...]).astype(o_ref.dtype)


def dense_add_layernorm(x, w, b, residual, gamma, beta, *, eps=1e-12,
                        out_dtype=jnp.bfloat16, tm=256, tk=512):
    M, K = x.shape
    N = w.shape[1]
    tm = _pick_tile(M, tm, 8)
    tk = _pick_tile(K, tk, 128)
    grid = (M // tm, K // tk)
    return pl.pallas_call(
        functools.partial(_dense_ln_kernel, eps=eps),
        grid=grid,
        in_specs=[
            pl.BlockSpec((tm, tk), lambda i, k: (i, k)),
            pl.BlockSpec((tk, N), lambda i, k: (k, 0)),
            pl.BlockSpec((1, N), lambda i, k: (0, 0)),
            pl.BlockSpec((tm, N), lambda i, k: (i, 0)),
            pl.BlockSpec((1, N), lambda i, k: (0, 0)),
            pl.BlockSpec((1, N), lambda i, k: (0, 0)),
        ],
        out_specs=pl.BlockSpec((tm, N), lambda i, k: (i, 0)),
        out_shape=jax.ShapeDtypeStruct((M, N), out_dtype),
        scratch_shapes=[pltpu.VMEM((tm, N), jnp.float32)],
        compiler_params=pltpu.CompilerParams(
            dimension_semantics=("parallel", "arbitrary"),
            vmem_limit_bytes=_VMEM_LIMIT),
    )(x, w, b.reshape(1, N).astype(jnp.float32), residual,
      gamma.reshape(1, N).astype(jnp.float32), beta.reshape(1, N).astype(jnp.float32))


# ------------------------------ attention --------------------------------------

def _attention_kernel(qkv_ref, o_ref, *, num_heads, scale):
    """Per batch element: all heads.  qkv block [1, S, 3H] -> context block [1, S, H]."""
    H = o_ref.shape[2]
    dh = H // num_heads
    qkv = qkv_ref[0]                     # [S, 3H] bf16
    ctxs = []
    for h in range(num_heads):           # static unroll; no wrapper-side head transposes
        q = qkv[:, h * dh:(h + 1) * dh]
        k = qkv[:, H + h * dh:H + (h + 1) * dh]
        v = qkv[:, 2 * H + h * dh:2 * H + (h + 1) * dh]
        # contract last dims directly (no explicit K transpose)
        s = jax.lax.dot_general(q, k, (((1,), (1,)), ((), ())),
                                preferred_element_type=jnp.float32) * scale
        s = s - jnp.max(s, axis=-1, keepdims=True)
        p = jnp.exp(s)
        p = p * pl.reciprocal(jnp.sum(p, axis=-1, keepdims=True), approx=True)
        ctxs.append(jnp.dot(p.astype(v.dtype), v, preferred_element_type=jnp.float32))
    # single lane-dense store of the full [S, H] context slab
    o_ref[0] = jnp.concatenate(ctxs, axis=-1).astype(o_ref.dtype)
    # TODO(synk): for very long sequences, tile kv flash-style (online softmax) instead
    # of materializing the full SxS score block per head.


def attention(qkv, *, num_heads):
    """qkv: [B, S, 3H] bf16 -> context [B, S, H] bf16."""
    B, S, H3 = qkv.shape
    H = H3 // 3
    scale = 1.0 / math.sqrt(H // num_heads)
    return pl.pallas_call(
        functools.partial(_attention_kernel, num_heads=num_heads, scale=scale),
        grid=(B,),
        in_specs=[pl.BlockSpec((1, S, H3), lambda b: (b, 0, 0))],
        out_specs=pl.BlockSpec((1, S, H), lambda b: (b, 0, 0)),
        out_shape=jax.ShapeDtypeStruct((B, S, H), jnp.bfloat16),
        compiler_params=pltpu.CompilerParams(
            dimension_semantics=("parallel",),
            vmem_limit_bytes=_VMEM_LIMIT),
    )(qkv)


# -------------------- embeddings: (word + pos + type) -> LayerNorm -------------

def _emb_ln_kernel(w_ref, p_ref, t_ref, g_ref, b_ref, o_ref, *, eps):
    x = (w_ref[0].astype(jnp.float32) + p_ref[...].astype(jnp.float32)
         + t_ref[...].astype(jnp.float32))          # pos/type broadcast for free in-kernel
    mu = jnp.mean(x, axis=-1, keepdims=True)
    var = jnp.mean(jnp.square(x - mu), axis=-1, keepdims=True)
    y = (x - mu) * jax.lax.rsqrt(var + eps)
    o_ref[0] = (y * g_ref[...] + b_ref[...]).astype(o_ref.dtype)


def embed_layernorm(word, pos, typ, gamma, beta, *, eps=1e-12):
    B, S, H = word.shape
    return pl.pallas_call(
        functools.partial(_emb_ln_kernel, eps=eps),
        grid=(B,),
        in_specs=[
            pl.BlockSpec((1, S, H), lambda b: (b, 0, 0)),
            pl.BlockSpec((S, H), lambda b: (0, 0)),
            pl.BlockSpec((1, H), lambda b: (0, 0)),
            pl.BlockSpec((1, H), lambda b: (0, 0)),
            pl.BlockSpec((1, H), lambda b: (0, 0)),
        ],
        out_specs=pl.BlockSpec((1, S, H), lambda b: (b, 0, 0)),
        out_shape=jax.ShapeDtypeStruct((B, S, H), jnp.bfloat16),
        compiler_params=pltpu.CompilerParams(
            dimension_semantics=("parallel",),
            vmem_limit_bytes=_VMEM_LIMIT),
    )(word, pos, typ.reshape(1, H),
      gamma.reshape(1, H).astype(jnp.float32), beta.reshape(1, H).astype(jnp.float32))


# --------------------------- Model (glue in JAX) --------------------------------

def init_params(key, *, vocab_size, hidden, num_layers, num_heads, intermediate,
                max_pos, type_vocab, num_classes):
    def nrm(k, shape, std=0.02):
        return (std * jax.random.normal(k, shape, dtype=jnp.float32)).astype(jnp.bfloat16)

    keys = iter(jax.random.split(key, 8 + num_layers * 8))
    p = {
        "word_emb": nrm(next(keys), (vocab_size, hidden)),
        "pos_emb": nrm(next(keys), (max_pos, hidden)),
        "type_emb": nrm(next(keys), (type_vocab, hidden)),
        "emb_ln_g": jnp.ones((hidden,), jnp.float32),
        "emb_ln_b": jnp.zeros((hidden,), jnp.float32),
        "cls_w": nrm(next(keys), (hidden, num_classes)),
        "cls_b": jnp.zeros((num_classes,), jnp.float32),
        "layers": [],
    }
    for _ in range(num_layers):
        layer = {
            # fused Q|K|V projection
            "w_qkv": nrm(next(keys), (hidden, 3 * hidden)),
            "b_qkv": jnp.zeros((3 * hidden,), jnp.float32),
            "wo": nrm(next(keys), (hidden, hidden)), "bo": jnp.zeros((hidden,), jnp.float32),
            "ln1_g": jnp.ones((hidden,), jnp.float32), "ln1_b": jnp.zeros((hidden,), jnp.float32),
            "wi": nrm(next(keys), (hidden, intermediate)), "bi": jnp.zeros((intermediate,), jnp.float32),
            "wo2": nrm(next(keys), (intermediate, hidden)), "bo2": jnp.zeros((hidden,), jnp.float32),
            "ln2_g": jnp.ones((hidden,), jnp.float32), "ln2_b": jnp.zeros((hidden,), jnp.float32),
        }
        p["layers"].append(layer)
    return p


def encoder_layer(x, p, B, S, num_heads):
    M, H = x.shape

    # fused Q/K/V projection: one matmul, one activation read
    qkv = dense(x, p["w_qkv"], p["b_qkv"])                       # [B*S, 3H] bf16
    ctx = attention(qkv.reshape(B, S, 3 * H), num_heads=num_heads).reshape(M, H)

    # attention output projection with fused residual-add + LayerNorm epilogue
    x = dense_add_layernorm(ctx, p["wo"], p["bo"], x, p["ln1_g"], p["ln1_b"])

    # FFN: up-proj + GELU, then down-proj with fused residual-add + LayerNorm
    h = dense(x, p["wi"], p["bi"], activation="gelu")
    x = dense_add_layernorm(h, p["wo2"], p["bo2"], x, p["ln2_g"], p["ln2_b"])
    return x


def protbert_classifier_forward(params, input_ids, *, num_heads):
    B, S = input_ids.shape
    H = params["word_emb"].shape[1]

    # Embedding lookup as a gather (no one-hot matmul); position_ids = 0..S-1, token_type = 0.
    # TODO(synk): no attention mask is applied (matches the stated `BertModel(x)` call).
    word = jnp.take(params["word_emb"], input_ids.reshape(-1), axis=0).reshape(B, S, H)
    pos = params["pos_emb"][:S]                                   # [S, H]
    typ = params["type_emb"][0]                                   # [H]
    x = embed_layernorm(word, pos, typ, params["emb_ln_g"], params["emb_ln_b"])
    x = x.reshape(B * S, H)

    for layer in params["layers"]:
        x = encoder_layer(x, layer, B, S, num_heads)

    # last_hidden_state[:, 0, :]  (CLS token)
    cls = x.reshape(B, S, H)[:, 0, :]

    # TODO(synk): Classifier internals not shown in the source; assumed a single
    # Linear(d_model, num_class) head (dropout is a no-op in eval).
    logits = dense(cls, params["cls_w"], params["cls_b"], out_dtype=jnp.float32)
    return logits


# ----------------------------------- main ---------------------------------------

if __name__ == "__main__":
    # Small BERT-like config consistent with the module's forward.
    VOCAB = 100
    HIDDEN = 32
    NUM_LAYERS = 2
    NUM_HEADS = 2
    INTERMEDIATE = 64
    MAX_POS = 16
    TYPE_VOCAB = 2
    NUM_CLASSES = 6   # len(params.SP_LABELS) — signal-peptide label set
    B, S = 2, 8

    key = jax.random.PRNGKey(0)
    k_params, k_ids = jax.random.split(key)
    params = init_params(
        k_params, vocab_size=VOCAB, hidden=HIDDEN, num_layers=NUM_LAYERS,
        num_heads=NUM_HEADS, intermediate=INTERMEDIATE, max_pos=MAX_POS,
        type_vocab=TYPE_VOCAB, num_classes=NUM_CLASSES,
    )
    input_ids = jax.random.randint(k_ids, (B, S), 0, VOCAB, dtype=jnp.int32)

    fwd = jax.jit(functools.partial(protbert_classifier_forward, num_heads=NUM_HEADS))
    logits = fwd(params, input_ids)
    jax.block_until_ready(logits)
    assert logits.shape == (B, NUM_CLASSES), logits.shape
    print("KERNEL_OK")
</pallas_src>

<mosaic_0001>
module attributes {stable_mosaic.version = 11 : i64} {
  func.func @_dense_kernel(%arg0: i32, %arg1: i32, %arg2: i32, %arg3: memref<16x32xbf16, #tpu.memory_space<vmem>>, %arg4: memref<32x96xbf16, #tpu.memory_space<vmem>>, %arg5: memref<1x96xf32, #tpu.memory_space<vmem>>, %arg6: memref<16x96xbf16, #tpu.memory_space<vmem>>, %arg7: memref<16x96xf32, #tpu.memory_space<vmem>>) attributes {dimension_semantics = [#tpu.dimension_semantics<parallel>, #tpu.dimension_semantics<parallel>, #tpu.dimension_semantics<arbitrary>], iteration_bounds = array<i64: 1, 1, 1>, scalar_prefetch = 0 : i64, scratch_operands = 1 : i64, tpu.core_type = #tpu.core_type<tc>, window_params = [{transform_indices = @transform_0, window_bounds = array<i64: 16, 32>}, {transform_indices = @transform_1, window_bounds = array<i64: 32, 96>}, {transform_indices = @transform_2, window_bounds = array<i64: 1, 96>}, {transform_indices = @transform_3, window_bounds = array<i64: 16, 96>}]} {
    %c0_i32 = arith.constant 0 : i32
    %0 = arith.cmpi eq, %arg2, %c0_i32 : i32
    %1 = arith.extui %0 : i1 to i32
    %c0_i32_0 = arith.constant 0 : i32
    %2 = arith.cmpi ne, %1, %c0_i32_0 : i32
    scf.if %2 {
      %cst_10 = arith.constant 0.000000e+00 : f32
      %12 = vector.broadcast %cst_10 : f32 to vector<16x96xf32>
      %c0_11 = arith.constant 0 : index
      %c0_12 = arith.constant 0 : index
      %13 = vector.load %arg7[%c0_11, %c0_12] : memref<16x96xf32, #tpu.memory_space<vmem>>, vector<16x96xf32>
      tpu.vector_store %arg7[%c0_11, %c0_12], %12 {strides = array<i32>} : memref<16x96xf32, #tpu.memory_space<vmem>>, vector<16x96xf32>,
    } else {
    }
    %c0 = arith.constant 0 : index
    %c0_1 = arith.constant 0 : index
    %3 = vector.load %arg7[%c0, %c0_1] : memref<16x96xf32, #tpu.memory_space<vmem>>, vector<16x96xf32>
    %c0_2 = arith.constant 0 : index
    %c0_3 = arith.constant 0 : index
    %4 = vector.load %arg3[%c0_2, %c0_3] : memref<16x32xbf16, #tpu.memory_space<vmem>>, vector<16x32xbf16>
    %c0_4 = arith.constant 0 : index
    %c0_5 = arith.constant 0 : index
    %5 = vector.load %arg4[%c0_4, %c0_5] : memref<32x96xbf16, #tpu.memory_space<vmem>>, vector<32x96xbf16>
    %cst = arith.constant dense<0.000000e+00> : vector<16x96xf32>
    %6 = tpu.matmul %4, %5, %cst {dimension_numbers = #tpu.dot_dimension_numbers<[1], [0], [0], [1], [0, 0, 1, 1], [], []>} : vector<16x32xbf16>, vector<32x96xbf16>, vector<16x96xf32> -> vector<16x96xf32>
    %7 = arith.addf %3, %6 : vector<16x96xf32>
    %c0_6 = arith.constant 0 : index
    %c0_7 = arith.constant 0 : index
    %8 = vector.load %arg7[%c0_6, %c0_7] : memref<16x96xf32, #tpu.memory_space<vmem>>, vector<16x96xf32>
    tpu.vector_store %arg7[%c0_6, %c0_7], %7 {strides = array<i32>} : memref<16x96xf32, #tpu.memory_space<vmem>>, vector<16x96xf32>,
    %c0_i32_8 = arith.constant 0 : i32
    %9 = arith.cmpi eq, %arg2, %c0_i32_8 : i32
    %10 = arith.extui %9 : i1 to i32
    %c0_i32_9 = arith.constant 0 : i32
    %11 = arith.cmpi ne, %10, %c0_i32_9 : i32
    scf.if %11 {
      %c0_10 = arith.constant 0 : index
      %c0_11 = arith.constant 0 : index
      %12 = vector.load %arg7[%c0_10, %c0_11] : memref<16x96xf32, #tpu.memory_space<vmem>>, vector<16x96xf32>
      %c0_12 = arith.constant 0 : index
      %c0_13 = arith.constant 0 : index
      %13 = vector.load %arg5[%c0_12, %c0_13] : memref<1x96xf32, #tpu.memory_space<vmem>>, vector<1x96xf32>
      %14 = vector.broadcast %13 : vector<1x96xf32> to vector<16x96xf32>
      %15 = arith.addf %12, %14 : vector<16x96xf32>
      %16 = arith.truncf %15 : vector<16x96xf32> to vector<16x96xbf16>
      %c0_14 = arith.constant 0 : index
      %c0_15 = arith.constant 0 : index
      %17 = vector.load %arg6[%c0_14, %c0_15] : memref<16x96xbf16, #tpu.memory_space<vmem>>, vector<16x96xbf16>
      tpu.vector_store %arg6[%c0_14, %c0_15], %16 {strides = array<i32>} : memref<16x96xbf16, #tpu.memory_space<vmem>>, vector<16x96xbf16>,
    } else {
    }
    return
  }
  func.func @transform_0(%arg0: i32, %arg1: i32, %arg2: i32) -> (i32, i32) {
    %c0_i32 = arith.constant 0 : i32
    return %arg0, %arg2 : i32, i32
  }
  func.func @transform_1(%arg0: i32, %arg1: i32, %arg2: i32) -> (i32, i32) {
    %c0_i32 = arith.constant 0 : i32
    return %arg2, %arg1 : i32, i32
  }
  func.func @transform_2(%arg0: i32, %arg1: i32, %arg2: i32) -> (i32, i32) {
    %c0_i32 = arith.constant 0 : i32
    %c0_i32_0 = arith.constant 0 : i32
    return %c0_i32, %arg1 : i32, i32
  }
  func.func @transform_3(%arg0: i32, %arg1: i32, %arg2: i32) -> (i32, i32) {
    %c0_i32 = arith.constant 0 : i32
    return %arg0, %arg1 : i32, i32
  }
}

module attributes {stable_mosaic.version = 11 : i64} {
  func.func @_attention_kernel(%arg0: i32, %arg1: memref<1x8x96xbf16, #tpu.memory_space<vmem>>, %arg2: memref<1x8x32xbf16, #tpu.memory_space<vmem>>) attributes {dimension_semantics = [#tpu.dimension_semantics<parallel>], iteration_bounds = array<i64: 2>, scalar_prefetch = 0 : i64, scratch_operands = 0 : i64, tpu.core_type = #tpu.core_type<tc>, window_params = [{transform_indices = @transform_0, window_bounds = array<i64: 1, 8, 96>}, {transform_indices = @transform_1, window_bounds = array<i64: 1, 8, 32>}]} {
    %c0 = arith.constant 0 : index
    %c0_0 = arith.constant 0 : index
    %c0_1 = arith.constant 0 : index
    %0 = vector.load %arg1[%c0, %c0_0, %c0_1] : memref<1x8x96xbf16, #tpu.memory_space<vmem>>, vector<1x8x96xbf16>
    %1 = vector.shape_cast %0 : vector<1x8x96xbf16> to vector<8x96xbf16>
    %2 = vector.extract_strided_slice %1 {offsets = [0, 0], sizes = [8, 16], strides = [1, 1]} : vector<8x96xbf16> to vector<8x16xbf16>
    %3 = vector.extract_strided_slice %1 {offsets = [0, 32], sizes = [8, 16], strides = [1, 1]} : vector<8x96xbf16> to vector<8x16xbf16>
    %4 = vector.extract_strided_slice %1 {offsets = [0, 64], sizes = [8, 16], strides = [1, 1]} : vector<8x96xbf16> to vector<8x16xbf16>
    %cst = arith.constant dense<0.000000e+00> : vector<8x8xf32>
    %5 = tpu.matmul %2, %3, %cst {dimension_numbers = #tpu.dot_dimension_numbers<[1], [1], [0], [0], [0, 0, 1, 0], [], []>} : vector<8x16xbf16>, vector<8x16xbf16>, vector<8x8xf32> -> vector<8x8xf32>
    %cst_2 = arith.constant 2.500000e-01 : f32
    %6 = vector.broadcast %cst_2 : f32 to vector<8x8xf32>
    %7 = arith.mulf %5, %6 : vector<8x8xf32>
    %cst_3 = arith.constant dense<0xFF800000> : vector<8xf32>
    %8 = vector.multi_reduction <maximumf>, %7, %cst_3 [1] : vector<8x8xf32> to vector<8xf32>
    %9 = vector.shape_cast %8 : vector<8xf32> to vector<8x1xf32>
    %10 = vector.broadcast %9 : vector<8x1xf32> to vector<8x8xf32>
    %11 = arith.subf %7, %10 : vector<8x8xf32>
    %12 = math.exp %11 : vector<8x8xf32>
    %cst_4 = arith.constant dense<0.000000e+00> : vector<8xf32>
    %13 = vector.multi_reduction <add>, %12, %cst_4 [1] : vector<8x8xf32> to vector<8xf32>
    %14 = vector.shape_cast %13 : vector<8xf32> to vector<8x1xf32>
    %15 = tpu.reciprocal %14 {approx = true} : vector<8x1xf32> -> vector<8x1xf32>
    %16 = vector.broadcast %15 : vector<8x1xf32> to vector<8x8xf32>
    %17 = arith.mulf %12, %16 : vector<8x8xf32>
    %18 = arith.truncf %17 : vector<8x8xf32> to vector<8x8xbf16>
    %cst_5 = arith.constant dense<0.000000e+00> : vector<8x16xf32>
    %19 = tpu.matmul %18, %4, %cst_5 {dimension_numbers = #tpu.dot_dimension_numbers<[1], [0], [0], [1], [0, 0, 1, 1], [], []>} : vector<8x8xbf16>, vector<8x16xbf16>, vector<8x16xf32> -> vector<8x16xf32>
    %20 = vector.extract_strided_slice %1 {offsets = [0, 16], sizes = [8, 16], strides = [1, 1]} : vector<8x96xbf16> to vector<8x16xbf16>
    %21 = vector.extract_strided_slice %1 {offsets = [0, 48], sizes = [8, 16], strides = [1, 1]} : vector<8x96xbf16> to vector<8x16xbf16>
    %22 = vector.extract_strided_slice %1 {offsets = [0, 80], sizes = [8, 16], strides = [1, 1]} : vector<8x96xbf16> to vector<8x16xbf16>
    %cst_6 = arith.constant dense<0.000000e+00> : vector<8x8xf32>
    %23 = tpu.matmul %20, %21, %cst_6 {dimension_numbers = #tpu.dot_dimension_numbers<[1], [1], [0], [0], [0, 0, 1, 0], [], []>} : vector<8x16xbf16>, vector<8x16xbf16>, vector<8x8xf32> -> vector<8x8xf32>
    %cst_7 = arith.constant 2.500000e-01 : f32
    %24 = vector.broadcast %cst_7 : f32 to vector<8x8xf32>
    %25 = arith.mulf %23, %24 : vector<8x8xf32>
    %cst_8 = arith.constant dense<0xFF800000> : vector<8xf32>
    %26 = vector.multi_reduction <maximumf>, %25, %cst_8 [1] : vector<8x8xf32> to vector<8xf32>
    %27 = vector.shape_cast %26 : vector<8xf32> to vector<8x1xf32>
    %28 = vector.broadcast %27 : vector<8x1xf32> to vector<8x8xf32>
    %29 = arith.subf %25, %28 : vector<8x8xf32>
    %30 = math.exp %29 : vector<8x8xf32>
    %cst_9 = arith.constant dense<0.000000e+00> : vector<8xf32>
    %31 = vector.multi_reduction <add>, %30, %cst_9 [1] : vector<8x8xf32> to vector<8xf32>
    %32 = vector.shape_cast %31 : vector<8xf32> to vector<8x1xf32>
    %33 = tpu.reciprocal %32 {approx = true} : vector<8x1xf32> -> vector<8x1xf32>
    %34 = vector.broadcast %33 : vector<8x1xf32> to vector<8x8xf32>
    %35 = arith.mulf %30, %34 : vector<8x8xf32>
    %36 = arith.truncf %35 : vector<8x8xf32> to vector<8x8xbf16>
    %cst_10 = arith.constant dense<0.000000e+00> : vector<8x16xf32>
    %37 = tpu.matmul %36, %22, %cst_10 {dimension_numbers = #tpu.dot_dimension_numbers<[1], [0], [0], [1], [0, 0, 1, 1], [], []>} : vector<8x8xbf16>, vector<8x16xbf16>, vector<8x16xf32> -> vector<8x16xf32>
    %38 = tpu.concatenate %19, %37 in 1 : vector<8x16xf32>, vector<8x16xf32> -> vector<8x32xf32>
    %39 = arith.truncf %38 : vector<8x32xf32> to vector<8x32xbf16>
    %c0_11 = arith.constant 0 : index
    %c0_12 = arith.constant 0 : index
    %c0_13 = arith.constant 0 : index
    %40 = vector.load %arg2[%c0_11, %c0_12, %c0_13] : memref<1x8x32xbf16, #tpu.memory_space<vmem>>, vector<1x8x32xbf16>
    %41 = vector.shape_cast %40 : vector<1x8x32xbf16> to vector<8x32xbf16>
    %42 = vector.shape_cast %39 : vector<8x32xbf16> to vector<1x8x32xbf16>
    tpu.vector_store %arg2[%c0_11, %c0_12, %c0_13], %42 {strides = array<i32>} : memref<1x8x32xbf16, #tpu.memory_space<vmem>>, vector<1x8x32xbf16>,
    return
  }
  func.func @transform_0(%arg0: i32) -> (i32, i32, i32) {
    %c0_i32 = arith.constant 0 : i32
    %c0_i32_0 = arith.constant 0 : i32
    %c0_i32_1 = arith.constant 0 : i32
    return %arg0, %c0_i32, %c0_i32_0 : i32, i32, i32
  }
  func.func @transform_1(%arg0: i32) -> (i32, i32, i32) {
    %c0_i32 = arith.constant 0 : i32
    %c0_i32_0 = arith.constant 0 : i32
    %c0_i32_1 = arith.constant 0 : i32
    return %arg0, %c0_i32, %c0_i32_0 : i32, i32, i32
  }
}

module attributes {stable_mosaic.version = 11 : i64} {
  func.func @_emb_ln_kernel(%arg0: i32, %arg1: memref<1x8x32xbf16, #tpu.memory_space<vmem>>, %arg2: memref<8x32xbf16, #tpu.memory_space<vmem>>, %arg3: memref<1x32xbf16, #tpu.memory_space<vmem>>, %arg4: memref<1x32xf32, #tpu.memory_space<vmem>>, %arg5: memref<1x32xf32, #tpu.memory_space<vmem>>, %arg6: memref<1x8x32xbf16, #tpu.memory_space<vmem>>) attributes {dimension_semantics = [#tpu.dimension_semantics<parallel>], iteration_bounds = array<i64: 2>, scalar_prefetch = 0 : i64, scratch_operands = 0 : i64, tpu.core_type = #tpu.core_type<tc>, window_params = [{transform_indices = @transform_0, window_bounds = array<i64: 1, 8, 32>}, {pipeline_mode = #tpu.pipeline_mode<synchronous>, transform_indices = @transform_1, window_bounds = array<i64: 8, 32>}, {pipeline_mode = #tpu.pipeline_mode<synchronous>, transform_indices = @transform_2, window_bounds = array<i64: 1, 32>}, {pipeline_mode = #tpu.pipeline_mode<synchronous>, transform_indices = @transform_3, window_bounds = array<i64: 1, 32>}, {pipeline_mode = #tpu.pipeline_mode<synchronous>, transform_indices = @transform_4, window_bounds = array<i64: 1, 32>}, {transform_indices = @transform_5, window_bounds = array<i64: 1, 8, 32>}]} {
    %c0 = arith.constant 0 : index
    %c0_0 = arith.constant 0 : index
    %c0_1 = arith.constant 0 : index
    %0 = vector.load %arg1[%c0, %c0_0, %c0_1] : memref<1x8x32xbf16, #tpu.memory_space<vmem>>, vector<1x8x32xbf16>
    %1 = vector.shape_cast %0 : vector<1x8x32xbf16> to vector<8x32xbf16>
    %2 = arith.extf %1 : vector<8x32xbf16> to vector<8x32xf32>
    %c0_2 = arith.constant 0 : index
    %c0_3 = arith.constant 0 : index
    %3 = vector.load %arg2[%c0_2, %c0_3] : memref<8x32xbf16, #tpu.memory_space<vmem>>, vector<8x32xbf16>
    %4 = arith.extf %3 : vector<8x32xbf16> to vector<8x32xf32>
    %5 = arith.addf %2, %4 : vector<8x32xf32>
    %c0_4 = arith.constant 0 : index
    %c0_5 = arith.constant 0 : index
    %6 = vector.load %arg3[%c0_4, %c0_5] : memref<1x32xbf16, #tpu.memory_space<vmem>>, vector<1x32xbf16>
    %7 = arith.extf %6 : vector<1x32xbf16> to vector<1x32xf32>
    %8 = vector.broadcast %7 : vector<1x32xf32> to vector<8x32xf32>
    %9 = arith.addf %5, %8 : vector<8x32xf32>
    %cst = arith.constant dense<0.000000e+00> : vector<8xf32>
    %10 = vector.multi_reduction <add>, %9, %cst [1] : vector<8x32xf32> to vector<8xf32>
    %11 = vector.shape_cast %10 : vector<8xf32> to vector<8x1xf32>
    %cst_6 = arith.constant 3.200000e+01 : f32
    %12 = vector.broadcast %cst_6 : f32 to vector<8x1xf32>
    %13 = arith.divf %11, %12 : vector<8x1xf32>
    %14 = vector.broadcast %13 : vector<8x1xf32> to vector<8x32xf32>
    %15 = arith.subf %9, %14 : vector<8x32xf32>
    %16 = arith.mulf %15, %15 : vector<8x32xf32>
    %cst_7 = arith.constant dense<0.000000e+00> : vector<8xf32>
    %17 = vector.multi_reduction <add>, %16, %cst_7 [1] : vector<8x32xf32> to vector<8xf32>
    %18 = vector.shape_cast %17 : vector<8xf32> to vector<8x1xf32>
    %cst_8 = arith.constant 3.200000e+01 : f32
    %19 = vector.broadcast %cst_8 : f32 to vector<8x1xf32>
    %20 = arith.divf %18, %19 : vector<8x1xf32>
    %21 = vector.broadcast %13 : vector<8x1xf32> to vector<8x32xf32>
    %22 = arith.subf %9, %21 : vector<8x32xf32>
    %cst_9 = arith.constant 9.99999996E-13 : f32
    %23 = vector.broadcast %cst_9 : f32 to vector<8x1xf32>
    %24 = arith.addf %20, %23 : vector<8x1xf32>
    %25 = math.rsqrt %24 : vector<8x1xf32>
    %26 = vector.broadcast %25 : vector<8x1xf32> to vector<8x32xf32>
    %27 = arith.mulf %22, %26 : vector<8x32xf32>
    %c0_10 = arith.constant 0 : index
    %c0_11 = arith.constant 0 : index
    %28 = vector.load %arg4[%c0_10, %c0_11] : memref<1x32xf32, #tpu.memory_space<vmem>>, vector<1x32xf32>
    %29 = vector.broadcast %28 : vector<1x32xf32> to vector<8x32xf32>
    %30 = arith.mulf %27, %29 : vector<8x32xf32>
    %c0_12 = arith.constant 0 : index
    %c0_13 = arith.constant 0 : index
    %31 = vector.load %arg5[%c0_12, %c0_13] : memref<1x32xf32, #tpu.memory_space<vmem>>, vector<1x32xf32>
    %32 = vector.broadcast %31 : vector<1x32xf32> to vector<8x32xf32>
    %33 = arith.addf %30, %32 : vector<8x32xf32>
    %34 = arith.truncf %33 : vector<8x32xf32> to vector<8x32xbf16>
    %c0_14 = arith.constant 0 : index
    %c0_15 = arith.constant 0 : index
    %c0_16 = arith.constant 0 : index
    %35 = vector.load %arg6[%c0_14, %c0_15, %c0_16] : memref<1x8x32xbf16, #tpu.memory_space<vmem>>, vector<1x8x32xbf16>
    %36 = vector.shape_cast %35 : vector<1x8x32xbf16> to vector<8x32xbf16>
    %37 = vector.shape_cast %34 : vector<8x32xbf16> to vector<1x8x32xbf16>
    tpu.vector_store %arg6[%c0_14, %c0_15, %c0_16], %37 {strides = array<i32>} : memref<1x8x32xbf16, #tpu.memory_space<vmem>>, vector<1x8x32xbf16>,
    return
  }
  func.func @transform_0(%arg0: i32) -> (i32, i32, i32) {
    %c0_i32 = arith.constant 0 : i32
    %c0_i32_0 = arith.constant 0 : i32
    %c0_i32_1 = arith.constant 0 : i32
    return %arg0, %c0_i32, %c0_i32_0 : i32, i32, i32
  }
  func.func @transform_1(%arg0: i32) -> (i32, i32) {
    %c0_i32 = arith.constant 0 : i32
    %c0_i32_0 = arith.constant 0 : i32
    %c0_i32_1 = arith.constant 0 : i32
    return %c0_i32, %c0_i32_0 : i32, i32
  }
  func.func @transform_2(%arg0: i32) -> (i32, i32) {
    %c0_i32 = arith.constant 0 : i32
    %c0_i32_0 = arith.constant 0 : i32
    %c0_i32_1 = arith.constant 0 : i32
    return %c0_i32, %c0_i32_0 : i32, i32
  }
  func.func @transform_3(%arg0: i32) -> (i32, i32) {
    %c0_i32 = arith.constant 0 : i32
    %c0_i32_0 = arith.constant 0 : i32
    %c0_i32_1 = arith.constant 0 : i32
    return %c0_i32, %c0_i32_0 : i32, i32
  }
  func.func @transform_4(%arg0: i32) -> (i32, i32) {
    %c0_i32 = arith.constant 0 : i32
    %c0_i32_0 = arith.constant 0 : i32
    %c0_i32_1 = arith.constant 0 : i32
    return %c0_i32, %c0_i32_0 : i32, i32
  }
  func.func @transform_5(%arg0: i32) -> (i32, i32, i32) {
    %c0_i32 = arith.constant 0 : i32
    %c0_i32_0 = arith.constant 0 : i32
    %c0_i32_1 = arith.constant 0 : i32
    return %arg0, %c0_i32, %c0_i32_0 : i32, i32, i32
  }
}

module attributes {stable_mosaic.version = 11 : i64} {
  func.func @_dense_ln_kernel(%arg0: i32, %arg1: i32, %arg2: memref<16x32xbf16, #tpu.memory_space<vmem>>, %arg3: memref<32x32xbf16, #tpu.memory_space<vmem>>, %arg4: memref<1x32xf32, #tpu.memory_space<vmem>>, %arg5: memref<16x32xbf16, #tpu.memory_space<vmem>>, %arg6: memref<1x32xf32, #tpu.memory_space<vmem>>, %arg7: memref<1x32xf32, #tpu.memory_space<vmem>>, %arg8: memref<16x32xbf16, #tpu.memory_space<vmem>>, %arg9: memref<16x32xf32, #tpu.memory_space<vmem>>) attributes {dimension_semantics = [#tpu.dimension_semantics<parallel>, #tpu.dimension_semantics<arbitrary>], iteration_bounds = array<i64: 1, 1>, scalar_prefetch = 0 : i64, scratch_operands = 1 : i64, tpu.core_type = #tpu.core_type<tc>, window_params = [{transform_indices = @transform_0, window_bounds = array<i64: 16, 32>}, {transform_indices = @transform_1, window_bounds = array<i64: 32, 32>}, {pipeline_mode = #tpu.pipeline_mode<synchronous>, transform_indices = @transform_2, window_bounds = array<i64: 1, 32>}, {transform_indices = @transform_3, window_bounds = array<i64: 16, 32>}, {pipeline_mode = #tpu.pipeline_mode<synchronous>, transform_indices = @transform_4, window_bounds = array<i64: 1, 32>}, {pipeline_mode = #tpu.pipeline_mode<synchronous>, transform_indices = @transform_5, window_bounds = array<i64: 1, 32>}, {transform_indices = @transform_6, window_bounds = array<i64: 16, 32>}]} {
    %c0_i32 = arith.constant 0 : i32
    %0 = arith.cmpi eq, %arg1, %c0_i32 : i32
    %1 = arith.extui %0 : i1 to i32
    %c0_i32_0 = arith.constant 0 : i32
    %2 = arith.cmpi ne, %1, %c0_i32_0 : i32
    scf.if %2 {
      %cst_10 = arith.constant 0.000000e+00 : f32
      %12 = vector.broadcast %cst_10 : f32 to vector<16x32xf32>
      %c0_11 = arith.constant 0 : index
      %c0_12 = arith.constant 0 : index
      %13 = vector.load %arg9[%c0_11, %c0_12] : memref<16x32xf32, #tpu.memory_space<vmem>>, vector<16x32xf32>
      tpu.vector_store %arg9[%c0_11, %c0_12], %12 {strides = array<i32>} : memref<16x32xf32, #tpu.memory_space<vmem>>, vector<16x32xf32>,
    } else {
    }
    %c0 = arith.constant 0 : index
    %c0_1 = arith.constant 0 : index
    %3 = vector.load %arg9[%c0, %c0_1] : memref<16x32xf32, #tpu.memory_space<vmem>>, vector<16x32xf32>
    %c0_2 = arith.constant 0 : index
    %c0_3 = arith.constant 0 : index
    %4 = vector.load %arg2[%c0_2, %c0_3] : memref<16x32xbf16, #tpu.memory_space<vmem>>, vector<16x32xbf16>
    %c0_4 = arith.constant 0 : index
    %c0_5 = arith.constant 0 : index
    %5 = vector.load %arg3[%c0_4, %c0_5] : memref<32x32xbf16, #tpu.memory_space<vmem>>, vector<32x32xbf16>
    %cst = arith.constant dense<0.000000e+00> : vector<16x32xf32>
    %6 = tpu.matmul %4, %5, %cst {dimension_numbers = #tpu.dot_dimension_numbers<[1], [0], [0], [1], [0, 0, 1, 1], [], []>} : vector<16x32xbf16>, vector<32x32xbf16>, vector<16x32xf32> -> vector<16x32xf32>
    %7 = arith.addf %3, %6 : vector<16x32xf32>
    %c0_6 = arith.constant 0 : index
    %c0_7 = arith.constant 0 : index
    %8 = vector.load %arg9[%c0_6, %c0_7] : memref<16x32xf32, #tpu.memory_space<vmem>>, vector<16x32xf32>
    tpu.vector_store %arg9[%c0_6, %c0_7], %7 {strides = array<i32>} : memref<16x32xf32, #tpu.memory_space<vmem>>, vector<16x32xf32>,
    %c0_i32_8 = arith.constant 0 : i32
    %9 = arith.cmpi eq, %arg1, %c0_i32_8 : i32
    %10 = arith.extui %9 : i1 to i32
    %c0_i32_9 = arith.constant 0 : i32
    %11 = arith.cmpi ne, %10, %c0_i32_9 : i32
    scf.if %11 {
      %c0_10 = arith.constant 0 : index
      %c0_11 = arith.constant 0 : index
      %12 = vector.load %arg9[%c0_10, %c0_11] : memref<16x32xf32, #tpu.memory_space<vmem>>, vector<16x32xf32>
      %c0_12 = arith.constant 0 : index
      %c0_13 = arith.constant 0 : index
      %13 = vector.load %arg4[%c0_12, %c0_13] : memref<1x32xf32, #tpu.memory_space<vmem>>, vector<1x32xf32>
      %14 = vector.broadcast %13 : vector<1x32xf32> to vector<16x32xf32>
      %15 = arith.addf %12, %14 : vector<16x32xf32>
      %c0_14 = arith.constant 0 : index
      %c0_15 = arith.constant 0 : index
      %16 = vector.load %arg5[%c0_14, %c0_15] : memref<16x32xbf16, #tpu.memory_space<vmem>>, vector<16x32xbf16>
      %17 = arith.extf %16 : vector<16x32xbf16> to vector<16x32xf32>
      %18 = arith.addf %15, %17 : vector<16x32xf32>
      %cst_16 = arith.constant dense<0.000000e+00> : vector<16xf32>
      %19 = vector.multi_reduction <add>, %18, %cst_16 [1] : vector<16x32xf32> to vector<16xf32>
      %20 = vector.shape_cast %19 : vector<16xf32> to vector<16x1xf32>
      %cst_17 = arith.constant 3.200000e+01 : f32
      %21 = vector.broadcast %cst_17 : f32 to vector<16x1xf32>
      %22 = arith.divf %20, %21 : vector<16x1xf32>
      %23 = vector.broadcast %22 : vector<16x1xf32> to vector<16x32xf32>
      %24 = arith.subf %18, %23 : vector<16x32xf32>
      %25 = arith.mulf %24, %24 : vector<16x32xf32>
      %cst_18 = arith.constant dense<0.000000e+00> : vector<16xf32>
      %26 = vector.multi_reduction <add>, %25, %cst_18 [1] : vector<16x32xf32> to vector<16xf32>
      %27 = vector.shape_cast %26 : vector<16xf32> to vector<16x1xf32>
      %cst_19 = arith.constant 3.200000e+01 : f32
      %28 = vector.broadcast %cst_19 : f32 to vector<16x1xf32>
      %29 = arith.divf %27, %28 : vector<16x1xf32>
      %30 = vector.broadcast %22 : vector<16x1xf32> to vector<16x32xf32>
      %31 = arith.subf %18, %30 : vector<16x32xf32>
      %cst_20 = arith.constant 9.99999996E-13 : f32
      %32 = vector.broadcast %cst_20 : f32 to vector<16x1xf32>
      %33 = arith.addf %29, %32 : vector<16x1xf32>
      %34 = math.rsqrt %33 : vector<16x1xf32>
      %35 = vector.broadcast %34 : vector<16x1xf32> to vector<16x32xf32>
      %36 = arith.mulf %31, %35 : vector<16x32xf32>
      %c0_21 = arith.constant 0 : index
      %c0_22 = arith.constant 0 : index
      %37 = vector.load %arg6[%c0_21, %c0_22] : memref<1x32xf32, #tpu.memory_space<vmem>>, vector<1x32xf32>
      %38 = vector.broadcast %37 : vector<1x32xf32> to vector<16x32xf32>
      %39 = arith.mulf %36, %38 : vector<16x32xf32>
      %c0_23 = arith.constant 0 : index
      %c0_24 = arith.constant 0 : index
      %40 = vector.load %arg7[%c0_23, %c0_24] : memref<1x32xf32, #tpu.memory_space<vmem>>, vector<1x32xf32>
      %41 = vector.broadcast %40 : vector<1x32xf32> to vector<16x32xf32>
      %42 = arith.addf %39, %41 : vector<16x32xf32>
      %43 = arith.truncf %42 : vector<16x32xf32> to vector<16x32xbf16>
      %c0_25 = arith.constant 0 : index
      %c0_26 = arith.constant 0 : index
      %44 = vector.load %arg8[%c0_25, %c0_26] : memref<16x32xbf16, #tpu.memory_space<vmem>>, vector<16x32xbf16>
      tpu.vector_store %arg8[%c0_25, %c0_26], %43 {strides = array<i32>} : memref<16x32xbf16, #tpu.memory_space<vmem>>, vector<16x32xbf16>,
    } else {
    }
    return
  }
  func.func @transform_0(%arg0: i32, %arg1: i32) -> (i32, i32) {
    %c0_i32 = arith.constant 0 : i32
    return %arg0, %arg1 : i32, i32
  }
  func.func @transform_1(%arg0: i32, %arg1: i32) -> (i32, i32) {
    %c0_i32 = arith.constant 0 : i32
    %c0_i32_0 = arith.constant 0 : i32
    return %arg1, %c0_i32 : i32, i32
  }
  func.func @transform_2(%arg0: i32, %arg1: i32) -> (i32, i32) {
    %c0_i32 = arith.constant 0 : i32
    %c0_i32_0 = arith.constant 0 : i32
    %c0_i32_1 = arith.constant 0 : i32
    return %c0_i32, %c0_i32_0 : i32, i32
  }
  func.func @transform_3(%arg0: i32, %arg1: i32) -> (i32, i32) {
    %c0_i32 = arith.constant 0 : i32
    %c0_i32_0 = arith.constant 0 : i32
    return %arg0, %c0_i32 : i32, i32
  }
  func.func @transform_4(%arg0: i32, %arg1: i32) -> (i32, i32) {
    %c0_i32 = arith.constant 0 : i32
    %c0_i32_0 = arith.constant 0 : i32
    %c0_i32_1 = arith.constant 0 : i32
    return %c0_i32, %c0_i32_0 : i32, i32
  }
  func.func @transform_5(%arg0: i32, %arg1: i32) -> (i32, i32) {
    %c0_i32 = arith.constant 0 : i32
    %c0_i32_0 = arith.constant 0 : i32
    %c0_i32_1 = arith.constant 0 : i32
    return %c0_i32, %c0_i32_0 : i32, i32
  }
  func.func @transform_6(%arg0: i32, %arg1: i32) -> (i32, i32) {
    %c0_i32 = arith.constant 0 : i32
    %c0_i32_0 = arith.constant 0 : i32
    return %arg0, %c0_i32 : i32, i32
  }
}

module attributes {stable_mosaic.version = 11 : i64} {
  func.func @_dense_kernel(%arg0: i32, %arg1: i32, %arg2: i32, %arg3: memref<16x32xbf16, #tpu.memory_space<vmem>>, %arg4: memref<32x64xbf16, #tpu.memory_space<vmem>>, %arg5: memref<1x64xf32, #tpu.memory_space<vmem>>, %arg6: memref<16x64xbf16, #tpu.memory_space<vmem>>, %arg7: memref<16x64xf32, #tpu.memory_space<vmem>>) attributes {dimension_semantics = [#tpu.dimension_semantics<parallel>, #tpu.dimension_semantics<parallel>, #tpu.dimension_semantics<arbitrary>], iteration_bounds = array<i64: 1, 1, 1>, scalar_prefetch = 0 : i64, scratch_operands = 1 : i64, tpu.core_type = #tpu.core_type<tc>, window_params = [{transform_indices = @transform_0, window_bounds = array<i64: 16, 32>}, {transform_indices = @transform_1, window_bounds = array<i64: 32, 64>}, {transform_indices = @transform_2, window_bounds = array<i64: 1, 64>}, {transform_indices = @transform_3, window_bounds = array<i64: 16, 64>}]} {
    %c0_i32 = arith.constant 0 : i32
    %0 = arith.cmpi eq, %arg2, %c0_i32 : i32
    %1 = arith.extui %0 : i1 to i32
    %c0_i32_0 = arith.constant 0 : i32
    %2 = arith.cmpi ne, %1, %c0_i32_0 : i32
    scf.if %2 {
      %cst_10 = arith.constant 0.000000e+00 : f32
      %12 = vector.broadcast %cst_10 : f32 to vector<16x64xf32>
      %c0_11 = arith.constant 0 : index
      %c0_12 = arith.constant 0 : index
      %13 = vector.load %arg7[%c0_11, %c0_12] : memref<16x64xf32, #tpu.memory_space<vmem>>, vector<16x64xf32>
      tpu.vector_store %arg7[%c0_11, %c0_12], %12 {strides = array<i32>} : memref<16x64xf32, #tpu.memory_space<vmem>>, vector<16x64xf32>,
    } else {
    }
    %c0 = arith.constant 0 : index
    %c0_1 = arith.constant 0 : index
    %3 = vector.load %arg7[%c0, %c0_1] : memref<16x64xf32, #tpu.memory_space<vmem>>, vector<16x64xf32>
    %c0_2 = arith.constant 0 : index
    %c0_3 = arith.constant 0 : index
    %4 = vector.load %arg3[%c0_2, %c0_3] : memref<16x32xbf16, #tpu.memory_space<vmem>>, vector<16x32xbf16>
    %c0_4 = arith.constant 0 : index
    %c0_5 = arith.constant 0 : index
    %5 = vector.load %arg4[%c0_4, %c0_5] : memref<32x64xbf16, #tpu.memory_space<vmem>>, vector<32x64xbf16>
    %cst = arith.constant dense<0.000000e+00> : vector<16x64xf32>
    %6 = tpu.matmul %4, %5, %cst {dimension_numbers = #tpu.dot_dimension_numbers<[1], [0], [0], [1], [0, 0, 1, 1], [], []>} : vector<16x32xbf16>, vector<32x64xbf16>, vector<16x64xf32> -> vector<16x64xf32>
    %7 = arith.addf %3, %6 : vector<16x64xf32>
    %c0_6 = arith.constant 0 : index
    %c0_7 = arith.constant 0 : index
    %8 = vector.load %arg7[%c0_6, %c0_7] : memref<16x64xf32, #tpu.memory_space<vmem>>, vector<16x64xf32>
    tpu.vector_store %arg7[%c0_6, %c0_7], %7 {strides = array<i32>} : memref<16x64xf32, #tpu.memory_space<vmem>>, vector<16x64xf32>,
    %c0_i32_8 = arith.constant 0 : i32
    %9 = arith.cmpi eq, %arg2, %c0_i32_8 : i32
    %10 = arith.extui %9 : i1 to i32
    %c0_i32_9 = arith.constant 0 : i32
    %11 = arith.cmpi ne, %10, %c0_i32_9 : i32
    scf.if %11 {
      %c0_10 = arith.constant 0 : index
      %c0_11 = arith.constant 0 : index
      %12 = vector.load %arg7[%c0_10, %c0_11] : memref<16x64xf32, #tpu.memory_space<vmem>>, vector<16x64xf32>
      %c0_12 = arith.constant 0 : index
      %c0_13 = arith.constant 0 : index
      %13 = vector.load %arg5[%c0_12, %c0_13] : memref<1x64xf32, #tpu.memory_space<vmem>>, vector<1x64xf32>
      %14 = vector.broadcast %13 : vector<1x64xf32> to vector<16x64xf32>
      %15 = arith.addf %12, %14 : vector<16x64xf32>
      %cst_14 = arith.constant 5.000000e-01 : f32
      %16 = vector.broadcast %cst_14 : f32 to vector<16x64xf32>
      %17 = arith.mulf %16, %15 : vector<16x64xf32>
      %cst_15 = arith.constant 4.471500e-02 : f32
      %18 = vector.broadcast %cst_15 : f32 to vector<16x64xf32>
      %19 = arith.mulf %18, %15 : vector<16x64xf32>
      %20 = arith.mulf %19, %15 : vector<16x64xf32>
      %21 = arith.mulf %20, %15 : vector<16x64xf32>
      %22 = arith.addf %15, %21 : vector<16x64xf32>
      %cst_16 = arith.constant 0.797884583 : f32
      %23 = vector.broadcast %cst_16 : f32 to vector<16x64xf32>
      %24 = arith.mulf %23, %22 : vector<16x64xf32>
      %25 = math.tanh %24 : vector<16x64xf32>
      %cst_17 = arith.constant 1.000000e+00 : f32
      %26 = vector.broadcast %cst_17 : f32 to vector<16x64xf32>
      %27 = arith.addf %26, %25 : vector<16x64xf32>
      %28 = arith.mulf %17, %27 : vector<16x64xf32>
      %29 = arith.truncf %28 : vector<16x64xf32> to vector<16x64xbf16>
      %c0_18 = arith.constant 0 : index
      %c0_19 = arith.constant 0 : index
      %30 = vector.load %arg6[%c0_18, %c0_19] : memref<16x64xbf16, #tpu.memory_space<vmem>>, vector<16x64xbf16>
      tpu.vector_store %arg6[%c0_18, %c0_19], %29 {strides = array<i32>} : memref<16x64xbf16, #tpu.memory_space<vmem>>, vector<16x64xbf16>,
    } else {
    }
    return
  }
  func.func @transform_0(%arg0: i32, %arg1: i32, %arg2: i32) -> (i32, i32) {
    %c0_i32 = arith.constant 0 : i32
    return %arg0, %arg2 : i32, i32
  }
  func.func @transform_1(%arg0: i32, %arg1: i32, %arg2: i32) -> (i32, i32) {
    %c0_i32 = arith.constant 0 : i32
    return %arg2, %arg1 : i32, i32
  }
  func.func @transform_2(%arg0: i32, %arg1: i32, %arg2: i32) -> (i32, i32) {
    %c0_i32 = arith.constant 0 : i32
    %c0_i32_0 = arith.constant 0 : i32
    return %c0_i32, %arg1 : i32, i32
  }
  func.func @transform_3(%arg0: i32, %arg1: i32, %arg2: i32) -> (i32, i32) {
    %c0_i32 = arith.constant 0 : i32
    return %arg0, %arg1 : i32, i32
  }
}

module attributes {stable_mosaic.version = 11 : i64} {
  func.func @_dense_ln_kernel(%arg0: i32, %arg1: i32, %arg2: memref<16x64xbf16, #tpu.memory_space<vmem>>, %arg3: memref<64x32xbf16, #tpu.memory_space<vmem>>, %arg4: memref<1x32xf32, #tpu.memory_space<vmem>>, %arg5: memref<16x32xbf16, #tpu.memory_space<vmem>>, %arg6: memref<1x32xf32, #tpu.memory_space<vmem>>, %arg7: memref<1x32xf32, #tpu.memory_space<vmem>>, %arg8: memref<16x32xbf16, #tpu.memory_space<vmem>>, %arg9: memref<16x32xf32, #tpu.memory_space<vmem>>) attributes {dimension_semantics = [#tpu.dimension_semantics<parallel>, #tpu.dimension_semantics<arbitrary>], iteration_bounds = array<i64: 1, 1>, scalar_prefetch = 0 : i64, scratch_operands = 1 : i64, tpu.core_type = #tpu.core_type<tc>, window_params = [{transform_indices = @transform_0, window_bounds = array<i64: 16, 64>}, {transform_indices = @transform_1, window_bounds = array<i64: 64, 32>}, {pipeline_mode = #tpu.pipeline_mode<synchronous>, transform_indices = @transform_2, window_bounds = array<i64: 1, 32>}, {transform_indices = @transform_3, window_bounds = array<i64: 16, 32>}, {pipeline_mode = #tpu.pipeline_mode<synchronous>, transform_indices = @transform_4, window_bounds = array<i64: 1, 32>}, {pipeline_mode = #tpu.pipeline_mode<synchronous>, transform_indices = @transform_5, window_bounds = array<i64: 1, 32>}, {transform_indices = @transform_6, window_bounds = array<i64: 16, 32>}]} {
    %c0_i32 = arith.constant 0 : i32
    %0 = arith.cmpi eq, %arg1, %c0_i32 : i32
    %1 = arith.extui %0 : i1 to i32
    %c0_i32_0 = arith.constant 0 : i32
    %2 = arith.cmpi ne, %1, %c0_i32_0 : i32
    scf.if %2 {
      %cst_10 = arith.constant 0.000000e+00 : f32
      %12 = vector.broadcast %cst_10 : f32 to vector<16x32xf32>
      %c0_11 = arith.constant 0 : index
      %c0_12 = arith.constant 0 : index
      %13 = vector.load %arg9[%c0_11, %c0_12] : memref<16x32xf32, #tpu.memory_space<vmem>>, vector<16x32xf32>
      tpu.vector_store %arg9[%c0_11, %c0_12], %12 {strides = array<i32>} : memref<16x32xf32, #tpu.memory_space<vmem>>, vector<16x32xf32>,
    } else {
    }
    %c0 = arith.constant 0 : index
    %c0_1 = arith.constant 0 : index
    %3 = vector.load %arg9[%c0, %c0_1] : memref<16x32xf32, #tpu.memory_space<vmem>>, vector<16x32xf32>
    %c0_2 = arith.constant 0 : index
    %c0_3 = arith.constant 0 : index
    %4 = vector.load %arg2[%c0_2, %c0_3] : memref<16x64xbf16, #tpu.memory_space<vmem>>, vector<16x64xbf16>
    %c0_4 = arith.constant 0 : index
    %c0_5 = arith.constant 0 : index
    %5 = vector.load %arg3[%c0_4, %c0_5] : memref<64x32xbf16, #tpu.memory_space<vmem>>, vector<64x32xbf16>
    %cst = arith.constant dense<0.000000e+00> : vector<16x32xf32>
    %6 = tpu.matmul %4, %5, %cst {dimension_numbers = #tpu.dot_dimension_numbers<[1], [0], [0], [1], [0, 0, 1, 1], [], []>} : vector<16x64xbf16>, vector<64x32xbf16>, vector<16x32xf32> -> vector<16x32xf32>
    %7 = arith.addf %3, %6 : vector<16x32xf32>
    %c0_6 = arith.constant 0 : index
    %c0_7 = arith.constant 0 : index
    %8 = vector.load %arg9[%c0_6, %c0_7] : memref<16x32xf32, #tpu.memory_space<vmem>>, vector<16x32xf32>
    tpu.vector_store %arg9[%c0_6, %c0_7], %7 {strides = array<i32>} : memref<16x32xf32, #tpu.memory_space<vmem>>, vector<16x32xf32>,
    %c0_i32_8 = arith.constant 0 : i32
    %9 = arith.cmpi eq, %arg1, %c0_i32_8 : i32
    %10 = arith.extui %9 : i1 to i32
    %c0_i32_9 = arith.constant 0 : i32
    %11 = arith.cmpi ne, %10, %c0_i32_9 : i32
    scf.if %11 {
      %c0_10 = arith.constant 0 : index
      %c0_11 = arith.constant 0 : index
      %12 = vector.load %arg9[%c0_10, %c0_11] : memref<16x32xf32, #tpu.memory_space<vmem>>, vector<16x32xf32>
      %c0_12 = arith.constant 0 : index
      %c0_13 = arith.constant 0 : index
      %13 = vector.load %arg4[%c0_12, %c0_13] : memref<1x32xf32, #tpu.memory_space<vmem>>, vector<1x32xf32>
      %14 = vector.broadcast %13 : vector<1x32xf32> to vector<16x32xf32>
      %15 = arith.addf %12, %14 : vector<16x32xf32>
      %c0_14 = arith.constant 0 : index
      %c0_15 = arith.constant 0 : index
      %16 = vector.load %arg5[%c0_14, %c0_15] : memref<16x32xbf16, #tpu.memory_space<vmem>>, vector<16x32xbf16>
      %17 = arith.extf %16 : vector<16x32xbf16> to vector<16x32xf32>
      %18 = arith.addf %15, %17 : vector<16x32xf32>
      %cst_16 = arith.constant dense<0.000000e+00> : vector<16xf32>
      %19 = vector.multi_reduction <add>, %18, %cst_16 [1] : vector<16x32xf32> to vector<16xf32>
      %20 = vector.shape_cast %19 : vector<16xf32> to vector<16x1xf32>
      %cst_17 = arith.constant 3.200000e+01 : f32
      %21 = vector.broadcast %cst_17 : f32 to vector<16x1xf32>
      %22 = arith.divf %20, %21 : vector<16x1xf32>
      %23 = vector.broadcast %22 : vector<16x1xf32> to vector<16x32xf32>
      %24 = arith.subf %18, %23 : vector<16x32xf32>
      %25 = arith.mulf %24, %24 : vector<16x32xf32>
      %cst_18 = arith.constant dense<0.000000e+00> : vector<16xf32>
      %26 = vector.multi_reduction <add>, %25, %cst_18 [1] : vector<16x32xf32> to vector<16xf32>
      %27 = vector.shape_cast %26 : vector<16xf32> to vector<16x1xf32>
      %cst_19 = arith.constant 3.200000e+01 : f32
      %28 = vector.broadcast %cst_19 : f32 to vector<16x1xf32>
      %29 = arith.divf %27, %28 : vector<16x1xf32>
      %30 = vector.broadcast %22 : vector<16x1xf32> to vector<16x32xf32>
      %31 = arith.subf %18, %30 : vector<16x32xf32>
      %cst_20 = arith.constant 9.99999996E-13 : f32
      %32 = vector.broadcast %cst_20 : f32 to vector<16x1xf32>
      %33 = arith.addf %29, %32 : vector<16x1xf32>
      %34 = math.rsqrt %33 : vector<16x1xf32>
      %35 = vector.broadcast %34 : vector<16x1xf32> to vector<16x32xf32>
      %36 = arith.mulf %31, %35 : vector<16x32xf32>
      %c0_21 = arith.constant 0 : index
      %c0_22 = arith.constant 0 : index
      %37 = vector.load %arg6[%c0_21, %c0_22] : memref<1x32xf32, #tpu.memory_space<vmem>>, vector<1x32xf32>
      %38 = vector.broadcast %37 : vector<1x32xf32> to vector<16x32xf32>
      %39 = arith.mulf %36, %38 : vector<16x32xf32>
      %c0_23 = arith.constant 0 : index
      %c0_24 = arith.constant 0 : index
      %40 = vector.load %arg7[%c0_23, %c0_24] : memref<1x32xf32, #tpu.memory_space<vmem>>, vector<1x32xf32>
      %41 = vector.broadcast %40 : vector<1x32xf32> to vector<16x32xf32>
      %42 = arith.addf %39, %41 : vector<16x32xf32>
      %43 = arith.truncf %42 : vector<16x32xf32> to vector<16x32xbf16>
      %c0_25 = arith.constant 0 : index
      %c0_26 = arith.constant 0 : index
      %44 = vector.load %arg8[%c0_25, %c0_26] : memref<16x32xbf16, #tpu.memory_space<vmem>>, vector<16x32xbf16>
      tpu.vector_store %arg8[%c0_25, %c0_26], %43 {strides = array<i32>} : memref<16x32xbf16, #tpu.memory_space<vmem>>, vector<16x32xbf16>,
    } else {
    }
    return
  }
  func.func @transform_0(%arg0: i32, %arg1: i32) -> (i32, i32) {
    %c0_i32 = arith.constant 0 : i32
    return %arg0, %arg1 : i32, i32
  }
  func.func @transform_1(%arg0: i32, %arg1: i32) -> (i32, i32) {
    %c0_i32 = arith.constant 0 : i32
    %c0_i32_0 = arith.constant 0 : i32
    return %arg1, %c0_i32 : i32, i32
  }
  func.func @transform_2(%arg0: i32, %arg1: i32) -> (i32, i32) {
    %c0_i32 = arith.constant 0 : i32
    %c0_i32_0 = arith.constant 0 : i32
    %c0_i32_1 = arith.constant 0 : i32
    return %c0_i32, %c0_i32_0 : i32, i32
  }
  func.func @transform_3(%arg0: i32, %arg1: i32) -> (i32, i32) {
    %c0_i32 = arith.constant 0 : i32
    %c0_i32_0 = arith.constant 0 : i32
    return %arg0, %c0_i32 : i32, i32
  }
  func.func @transform_4(%arg0: i32, %arg1: i32) -> (i32, i32) {
    %c0_i32 = arith.constant 0 : i32
    %c0_i32_0 = arith.constant 0 : i32
    %c0_i32_1 = arith.constant 0 : i32
    return %c0_i32, %c0_i32_0 : i32, i32
  }
  func.func @transform_5(%arg0: i32, %arg1: i32) -> (i32, i32) {
    %c0_i32 = arith.constant 0 : i32
    %c0_i32_0 = arith.constant 0 : i32
    %c0_i32_1 = arith.constant 0 : i32
    return %c0_i32, %c0_i32_0 : i32, i32
  }
  func.func @transform_6(%arg0: i32, %arg1: i32) -> (i32, i32) {
    %c0_i32 = arith.constant 0 : i32
    %c0_i32_0 = arith.constant 0 : i32
    return %arg0, %c0_i32 : i32, i32
  }
}

module attributes {stable_mosaic.version = 11 : i64} {
  func.func @_dense_kernel(%arg0: i32, %arg1: i32, %arg2: i32, %arg3: memref<2x32xbf16, #tpu.memory_space<vmem>>, %arg4: memref<32x6xbf16, #tpu.memory_space<vmem>>, %arg5: memref<1x6xf32, #tpu.memory_space<vmem>>, %arg6: memref<2x6xf32, #tpu.memory_space<vmem>>, %arg7: memref<2x6xf32, #tpu.memory_space<vmem>>) attributes {dimension_semantics = [#tpu.dimension_semantics<parallel>, #tpu.dimension_semantics<parallel>, #tpu.dimension_semantics<arbitrary>], iteration_bounds = array<i64: 1, 1, 1>, scalar_prefetch = 0 : i64, scratch_operands = 1 : i64, tpu.core_type = #tpu.core_type<tc>, window_params = [{transform_indices = @transform_0, window_bounds = array<i64: 2, 32>}, {transform_indices = @transform_1, window_bounds = array<i64: 32, 6>}, {transform_indices = @transform_2, window_bounds = array<i64: 1, 6>}, {transform_indices = @transform_3, window_bounds = array<i64: 2, 6>}]} {
    %c0_i32 = arith.constant 0 : i32
    %0 = arith.cmpi eq, %arg2, %c0_i32 : i32
    %1 = arith.extui %0 : i1 to i32
    %c0_i32_0 = arith.constant 0 : i32
    %2 = arith.cmpi ne, %1, %c0_i32_0 : i32
    scf.if %2 {
      %cst_10 = arith.constant 0.000000e+00 : f32
      %12 = vector.broadcast %cst_10 : f32 to vector<2x6xf32>
      %c0_11 = arith.constant 0 : index
      %c0_12 = arith.constant 0 : index
      %13 = vector.load %arg7[%c0_11, %c0_12] : memref<2x6xf32, #tpu.memory_space<vmem>>, vector<2x6xf32>
      tpu.vector_store %arg7[%c0_11, %c0_12], %12 {strides = array<i32>} : memref<2x6xf32, #tpu.memory_space<vmem>>, vector<2x6xf32>,
    } else {
    }
    %c0 = arith.constant 0 : index
    %c0_1 = arith.constant 0 : index
    %3 = vector.load %arg7[%c0, %c0_1] : memref<2x6xf32, #tpu.memory_space<vmem>>, vector<2x6xf32>
    %c0_2 = arith.constant 0 : index
    %c0_3 = arith.constant 0 : index
    %4 = vector.load %arg3[%c0_2, %c0_3] : memref<2x32xbf16, #tpu.memory_space<vmem>>, vector<2x32xbf16>
    %c0_4 = arith.constant 0 : index
    %c0_5 = arith.constant 0 : index
    %5 = vector.load %arg4[%c0_4, %c0_5] : memref<32x6xbf16, #tpu.memory_space<vmem>>, vector<32x6xbf16>
    %cst = arith.constant dense<0.000000e+00> : vector<2x6xf32>
    %6 = tpu.matmul %4, %5, %cst {dimension_numbers = #tpu.dot_dimension_numbers<[1], [0], [0], [1], [0, 0, 1, 1], [], []>} : vector<2x32xbf16>, vector<32x6xbf16>, vector<2x6xf32> -> vector<2x6xf32>
    %7 = arith.addf %3, %6 : vector<2x6xf32>
    %c0_6 = arith.constant 0 : index
    %c0_7 = arith.constant 0 : index
    %8 = vector.load %arg7[%c0_6, %c0_7] : memref<2x6xf32, #tpu.memory_space<vmem>>, vector<2x6xf32>
    tpu.vector_store %arg7[%c0_6, %c0_7], %7 {strides = array<i32>} : memref<2x6xf32, #tpu.memory_space<vmem>>, vector<2x6xf32>,
    %c0_i32_8 = arith.constant 0 : i32
    %9 = arith.cmpi eq, %arg2, %c0_i32_8 : i32
    %10 = arith.extui %9 : i1 to i32
    %c0_i32_9 = arith.constant 0 : i32
    %11 = arith.cmpi ne, %10, %c0_i32_9 : i32
    scf.if %11 {
      %c0_10 = arith.constant 0 : index
      %c0_11 = arith.constant 0 : index
      %12 = vector.load %arg7[%c0_10, %c0_11] : memref<2x6xf32, #tpu.memory_space<vmem>>, vector<2x6xf32>
      %c0_12 = arith.constant 0 : index
      %c0_13 = arith.constant 0 : index
      %13 = vector.load %arg5[%c0_12, %c0_13] : memref<1x6xf32, #tpu.memory_space<vmem>>, vector<1x6xf32>
      %14 = vector.broadcast %13 : vector<1x6xf32> to vector<2x6xf32>
      %15 = arith.addf %12, %14 : vector<2x6xf32>
      %c0_14 = arith.constant 0 : index
      %c0_15 = arith.constant 0 : index
      %16 = vector.load %arg6[%c0_14, %c0_15] : memref<2x6xf32, #tpu.memory_space<vmem>>, vector<2x6xf32>
      tpu.vector_store %arg6[%c0_14, %c0_15], %15 {strides = array<i32>} : memref<2x6xf32, #tpu.memory_space<vmem>>, vector<2x6xf32>,
    } else {
    }
    return
  }
  func.func @transform_0(%arg0: i32, %arg1: i32, %arg2: i32) -> (i32, i32) {
    %c0_i32 = arith.constant 0 : i32
    return %arg0, %arg2 : i32, i32
  }
  func.func @transform_1(%arg0: i32, %arg1: i32, %arg2: i32) -> (i32, i32) {
    %c0_i32 = arith.constant 0 : i32
    return %arg2, %arg1 : i32, i32
  }
  func.func @transform_2(%arg0: i32, %arg1: i32, %arg2: i32) -> (i32, i32) {
    %c0_i32 = arith.constant 0 : i32
    %c0_i32_0 = arith.constant 0 : i32
    return %c0_i32, %arg1 : i32, i32
  }
  func.func @transform_3(%arg0: i32, %arg1: i32, %arg2: i32) -> (i32, i32) {
    %c0_i32 = arith.constant 0 : i32
    return %arg0, %arg1 : i32, i32
  }
}

</mosaic_0001>

<bundles_post_ra>
// kernel: protbert_classifier_forward.12
= control target key start
LH: loop header
LB: loop body
LE: loop exit
PB: predicated region body
PF: predicated region fallthrough
CT: control target
= control target key end

     0   :  { %s378_s18 = smov 0   ;;  %s410_s0 = inlined_call_operand.vmem [shape: bf16[2,8,32], index: 0, kind: input, shape index: {}]   ;;  %s411_s1 = inlined_call_operand.vmem [shape: bf16[8,32], index: 1, kind: input, shape index: {}]   ;;  %s412_s2 = inlined_call_operand.vmem [shape: bf16[1,32], index: 2, kind: input, shape index: {}]   ;;  %s413_s3 = inlined_call_operand.vmem [shape: f32[1,32], index: 3, kind: input, shape index: {}]   ;;  %s414_s4 = inlined_call_operand.vmem [shape: f32[1,32], index: 4, kind: input, shape index: {}]   ;;  %s415_s5 = inlined_call_operand.vmem [shape: bf16[2,8,32], index: 5, kind: output, shape index: {}]  }
   0x1 LB: > { %s319_s19 = sadd.s32 4294967295, %s346_s18   ;;  %p323_p0 = scmp.ge.s32.totalorder %s346_s18, 1  ;;  %s346_s18 = sphi %s378_s18, %s15_s18  }
   0x2   : > { %p186_p1 = scmp.lt.s32.totalorder %s346_s18, 3 }
   0x4   : > { %p187_p2 = pnand %p323_p0, %p186_p1 }
   0x5   : > { %p212_p3 = scmp.lt.s32.totalorder (!%p187_p2), %s319_s19, 1  ;;  %v225_v0 = vld [vmem:[%s412_s2] sm:$0x1] (!%p187_p2)  ;;  %v227_v1 = vlaneseq (!%p187_p2)  ;;  %vm232_vm0 = vcmask (!%p187_p2), 261120   ;;  %vm264_vm1 = vcmask (!%p187_p2), 257024  }
   0x6   : > { %190 = sbr.rel (%p187_p2) target bundleno = 339 (0x153), region = 40  ;;  %v222_v2 = vld [vmem:[%s411_s1] sm:$0xf] (!%p187_p2)  ;;  %v226_v4 = vunpack.c.l.bf16 (!%p187_p2), %v225_v0 }
   0x7   : > { %v228_v3 = vshrl.u32 (!%p187_p2), %v227_v1, 7  ;;  %v223_v6 = vunpack.c.l.bf16 (!%p187_p2), %v222_v2  ;;  %v326_v22 = vld [vmem:[%s413_s3] ss:$0 sm:$0xff] (!%p187_p2) }
   0x8   : > { %v327_v24 = vld [vmem:[%s414_s4] ss:$0 sm:$0xff] (!%p187_p2) }
   0x9   : > { %v229_v5 = vsub.s32 (!%p187_p2), 0, %v228_v3 }
   0xb   : > { %v230_v9 = vrot.slane (!%p187_p2), %v226_v4, %v229_v5 }
   0xd   : > { %s417_s19 = smov (!%p212_p3, %s319_s19), 1 }
   0xe   : > { %s324_s24 = sshll.u32 %s417_s19, 2 }
   0xf   : > { %s215_s27 = scalar_lea.vmem %s410_s0, %s324_s24  ;;  %s219_s9 = scalar_lea.vmem %s415_s5, %s324_s24 }
  0x10   : > { %v220_v7 = vld [vmem:[%s215_s27] sm:$0xf] }
  0x11   : > { %v221_v8 = vunpack.c.l.bf16 %v220_v7 }
  0x13   : > { %v224_v10 = vadd.f32 %v223_v6, %v221_v8 }
  0x15   : > { %v231_v11 = vadd.f32 %v230_v9, %v224_v10 }
  0x17   : > { %v233_v12 = vsel %vm232_vm0, %v231_v11, 0.0 }
  0x18   : > { %234 = vadd.xlane.f32.xlu0 %v233_v12 }
  0xa5   : > { %v235_v13 = vpop.xlane.xlu0 %234 }
  0xa6   : > { %v237_v14 = vmul.f32 0.03125, %v235_v13 }
  0xa8   : > { %v238_v15 = vsub.f32 %v231_v11, %v237_v14 }
  0xaa   : > { %v239_v16 = vmul.f32 %v238_v15, %v238_v15 }
  0xac   : > { %v240_v17 = vsel %vm232_vm0, %v239_v16, 0.0 }
  0xad   : > { %241 = vadd.xlane.f32.xlu0 %v240_v17 }
 0x13a   : > { %v242_v18 = vpop.xlane.xlu0 %241 }
 0x13b   : > { %v243_v19 = vmul.f32 0.03125, %v242_v18 }
 0x13d   : > { %v244_v20 = vadd.f32 1e-12, %v243_v19 }
 0x13f   : > { %338 = vrsqrt.f32 %v244_v20 }
 0x149   : > { %v339_v21 = vpop.eup %338 }
 0x14a   : > { %v246_v23 = vmul.f32 %v339_v21, %v238_v15 }
 0x14c   : > { %v254_v25 = vmul.f32 %v326_v22, %v246_v23 }
 0x14e   : > { %v262_v26 = vadd.f32 %v327_v24, %v254_v25 }
 0x150   : > { %v263_v27 = vpack.c.bf16 %v262_v26, %v262_v26 }
 0x152   : > { %265 = vst.msk [vmem:[%s219_s9] sm:$0xf] %vm264_vm1, %v263_v27 }
 0x153 PF: > { %s15_s18 = sadd.s32 1, %s346_s18  }
 0x154   : > { %p12_p4 = scmp.ge.s32.totalorder %s15_s18, 4  }
 0x156   :  { %14 = sbr.rel (!%p12_p4) target bundleno = 1 (0x1), region = 70 }

// kernel: protbert_classifier_forward.13
= control target key start
LH: loop header
LB: loop body
LE: loop exit
PB: predicated region body
PF: predicated region fallthrough
CT: control target
= control target key end

     0   :  { %vm19_vm0 = vcmask 785408   ;;  %v151_v0 = vmov 0.0   ;;  %vm152_vm1 = vmmov 0   ;;  %vm47_vm2 = vcmask 261120   ;;  %s195_s1 = inlined_call_operand.vmem [shape: bf16[32,96], index: 1, kind: input, shape index: {}]   ;;  %s196_s0 = inlined_call_operand.vmem [shape: bf16[16,32], index: 0, kind: input, shape index: {}]   ;;  %s197_s2 = inlined_call_operand.vmem [shape: f32[1,96], index: 2, kind: input, shape index: {}]   ;;  %s198_s3 = inlined_call_operand.vmem [shape: bf16[16,96], index: 3, kind: output, shape index: {}]  }
   0x1   :  { %138 = vmatprep.subr.bf16.mxu0 %v151_v0  ;;  %v148_v1 = vld [vmem:[%s195_s1] sm:$0xff]   ;;  %142 = vmatprep.mubr.msk.bf16.mxu0 %vm152_vm1, %v151_v0  ;;  %20 = vst.msk [vmem:[#allocation2] sm:$0xff] %vm19_vm0, %v151_v0  ;;  %21 = vst.msk [vmem:[#allocation2 + $0x8] sm:$0xff] %vm19_vm0, %v151_v0  ;;  %v149_v2 = vld [vmem:[%s195_s1 + $0x8] sm:$0xff]   ;;  %vm119_vm3 = vcmask 781312  }
   0x2   :  { %139 = vmatpush3.bf16.msra.mxu0 %v148_v1  ;;  %v150_v3 = vld [vmem:[%s196_s0] sm:$0xff]  }
   0x3   :  { %140 = vmatprep.subr.bf16.mxu0 %v151_v0  ;;  %v130_v12 = vld [vmem:[%s197_s2] ss:$0 sm:$0xff] }
   0x6   :  { %141 = vmatpush3.bf16.msra.mxu0 %v149_v2 }
   0x8   :  { %v22_v4 = vld [vmem:[#allocation2] sm:$0xff]  ;;  %v23_v6 = vld [vmem:[#allocation2 + $0x8] sm:$0xff] }
   0x9   :  { %143 = vmatmul.mubr.msk.bf16.vlgmr.msra.gmra.mrb[0].mxu0 %vm47_vm2, %v150_v3 }
  0xdc   :  { %v85_v5 = vpop.f32.mrb[0].mxu0 }
  0xdd   :  { %v92_v7 = vadd.f32 %v85_v5, %v22_v4  ;;  %v144_v8 = vpop.f32.mrb[1].mxu0 }
  0xde   :  { %v88_v9 = vpop.f32.mrb[2].mxu0 }
  0xdf   :  { %95 = vst.msk [vmem:[#allocation2] sm:$0xff] %vm19_vm0, %v92_v7  ;;  %v93_v10 = vadd.f32 %v88_v9, %v23_v6  ;;  %v145_v11 = vpop.f32.mrb[3].mxu0 }
  0xe1   :  { %96 = vst.msk [vmem:[#allocation2 + $0x8] sm:$0xff] %vm19_vm0, %v93_v10 }
  0xe6   :  { %v100_v13 = vld [vmem:[#allocation2] sm:$0xff] }
  0xe7   :  { %v109_v14 = vadd.f32 %v130_v12, %v100_v13 }
  0xe8   :  { %v101_v15 = vld [vmem:[#allocation2 + $0x8] sm:$0xff] }
  0xe9   :  { %v133_v16 = vpack.c.bf16 %v109_v14, %v109_v14  ;;  %v110_v17 = vadd.f32 %v130_v12, %v101_v15 }
  0xeb   :  { %120 = vst.msk [vmem:[%s198_s3] sm:$0xf] %vm119_vm3, %v133_v16  ;;  %v134_v18 = vpack.c.bf16 %v110_v17, %v110_v17 }
  0xed   :  { %121 = vst.msk [vmem:[%s198_s3 + $0x4] sm:$0xf] %vm119_vm3, %v134_v18 }

// kernel: protbert_classifier_forward.14
= control target key start
LH: loop header
LB: loop body
LE: loop exit
PB: predicated region body
PF: predicated region fallthrough
CT: control target
= control target key end

     0   :  { %s498_s6 = smov 0   ;;  %s546_s0 = inlined_call_operand.vmem [shape: bf16[2,8,96], index: 0, kind: input, shape index: {}]   ;;  %s547_s1 = inlined_call_operand.vmem [shape: bf16[2,8,32], index: 1, kind: output, shape index: {}]  }
   0x1 LB: > { %s401_s7 = sadd.s32 4294967295, %s478_s6   ;;  %p405_p0 = scmp.ge.s32.totalorder %s478_s6, 1  ;;  %s478_s6 = sphi %s498_s6, %s11_s6  }
   0x2   : > { %p86_p1 = scmp.lt.s32.totalorder %s478_s6, 3 }
   0x4   : > { %p87_p2 = pnand %p405_p0, %p86_p1 }
   0x5   : > { %p104_p3 = scmp.lt.s32.totalorder (!%p87_p2), %s401_s7, 1  ;;  %v480_v0 = vmov (!%p87_p2), 0.0   ;;  %vm481_vm0 = vmmov (!%p87_p2), 0   ;;  %s482_s12 = smov (!%p87_p2), 96   ;;  %vm119_vm1 = vcmask (!%p87_p2), 130048   ;;  %vm167_vm2 = vcmask (!%p87_p2), 64512  }
   0x6   : > { %90 = sbr.rel (%p87_p2) target bundleno = 1541 (0x605), region = 24  ;;  %423 = vmatprep.subr.bf16.mxu0 (!%p87_p2), %v480_v0  ;;  %425 = vmatprep.mubr.msk.bf16.mxu0 (!%p87_p2), %vm481_vm0, %v480_v0  ;;  %s483_s13 = smov (!%p87_p2), 64   ;;  %vm185_vm3 = vcmask (!%p87_p2), 1043456   ;;  %vm346_vm4 = vcmask (!%p87_p2), 257024  }
   0x7   : > { %429 = vmatprep.subr.bf16.mxu1 (!%p87_p2), %v480_v0  ;;  %431 = vmatprep.mubr.msk.bf16.mxu1 (!%p87_p2), %vm481_vm0, %v480_v0  ;;  %s484_s14 = smov (!%p87_p2), 80   ;;  %s485_s15 = smov (!%p87_p2), 112  }
   0x8   : > { %s486_s16 = smov (!%p87_p2), 48   ;;  %s487_s17 = smov (!%p87_p2), 16  }
   0xd   : > { %s549_s7 = smov (!%p104_p3, %s401_s7), 1 }
   0xe   : > { %s406_s8 = sshll.u32 %s549_s7, 2 }
   0xf   : > { %s107_s11 = scalar_lea.vmem %s546_s0, %s406_s8  ;;  %s111_s20 = scalar_lea.vmem %s547_s1, %s406_s8 }
  0x10   : > { %v113_v1 = vld [vmem:[%s107_s11] sm:$0xf] }
  0x11   : > { %v516_v2 = vcombine.low %v113_v1, %v113_v1 }
  0x13   : > { %117 = vrot.lane.b32.xlu0 %v516_v2, %s482_s12  ;;  %180 = vrot.lane.b32.xlu1 %v516_v2, %s483_s13 }
  0x85   : > { %v118_v3 = vpop.permute.xlu0 %117  ;;  %v181_v11 = vpop.permute.xlu1 %180 }
  0x86   : > { %v124_v4 = vsel %vm119_vm1, %v118_v3, 0  ;;  %v187_v12 = vsel %vm185_vm3, %v181_v11, 0 }
  0x87   : > { %424 = vmatpush3.bf16.xpose.msra.mxu0 %v124_v4  ;;  %430 = vmatpush3.bf16.msra.mxu1 %v187_v12 }
  0x88   : > { %441 = vmatprep.subr.bf16.mxu0 %v480_v0  ;;  %435 = vmatprep.subr.bf16.mxu1 %v480_v0 }
  0x8e   : > { %426 = vmatmul.mubr.msk.bf16.vlgmr.msra.gmra.mrb[0].mxu0 %vm119_vm1, %v113_v1 }
  0x8f   : > { %443 = vmatprep.mubr.msk.bf16.mxu0 %vm481_vm0, %v480_v0 }
 0x161   : > { %v160_v5 = vpop.f32.mrb[0].mxu0 }
 0x162   : > { %v166_v6 = vmul.f32 0.25, %v160_v5  ;;  %v427_v7 = vpop.f32.mrb[1].mxu0 }
 0x163   : > { %v163_v8 = vpop.f32.mrb[2].mxu0 }
 0x164   : > { %v428_v9 = vpop.f32.mrb[3].mxu0  ;;  %v168_v10 = vsel %vm167_vm2, %v166_v6, -inf }
 0x165   : > { %169 = vmax.xlane.f32.xlu0 %v168_v10 }
 0x1f2   : > { %v170_v13 = vpop.xlane.xlu0 %169 }
 0x1f3   : > { %v171_v14 = vsub.f32 %v166_v6, %v170_v13 }
 0x1f5   : > { %v172_v15 = vmul.f32 1.442695, %v171_v14 }
 0x1f7   : > { %464 = vpow2.f32 %v172_v15 }
 0x201   : > { %v465_v16 = vpop.eup %464 }
 0x202   : > { %v174_v17 = vsel %vm167_vm2, %v465_v16, 0.0 }
 0x203   : > { %175 = vadd.xlane.f32.xlu1 %v174_v17 }
 0x214   : > { %231 = vrot.lane.b32.xlu1 %v516_v2, %s484_s14 }
 0x218   : > { %229 = vrot.lane.b32.xlu1 %v516_v2, %s485_s15 }
 0x290   : > { %v176_v18 = vpop.xlane.xlu1 %175 }
 0x291   : > { %466 = vrcp.f32 %v176_v18 }
 0x294   : > { %v232_v20 = vpop.permute.xlu1 %231 }
 0x295   : > { %v237_v22 = vsel %vm119_vm1, %v232_v20, 0 }
 0x298   : > { %v230_v24 = vpop.permute.xlu1 %229 }
 0x29b   : > { %v467_v19 = vpop.eup %466 }
 0x29c   : > { %v178_v21 = vmul.f32 %v467_v19, %v465_v16 }
 0x29e   : > { %v179_v23 = vpack.c.bf16 %v178_v21, %v178_v21 }
 0x2a0   : > { %432 = vmatmul.mubr.msk.bf16.vlgmr.msra.gmra.mrb[0].mxu1 %vm167_vm2, %v179_v23 }
 0x2a1   : > { %436 = vmatpush3.bf16.xpose.msra.mxu1 %v237_v22  ;;  %437 = vmatprep.mubr.msk.bf16.mxu1 %vm481_vm0, %v480_v0 }
 0x2a8   : > { %438 = vmatmul.mubr.msk.bf16.vlgmr.msra.gmra.mrb[4].mxu1 %vm119_vm1, %v230_v24 }
 0x373   : > { %v223_v25 = vpop.f32.mrb[0].mxu1 }
 0x374   : > { %v433_v26 = vpop.f32.mrb[1].mxu1 }
 0x375   : > { %v226_v27 = vpop.f32.mrb[2].mxu1 }
 0x376   : > { %v434_v28 = vpop.f32.mrb[3].mxu1 }
 0x37b   : > { %v273_v29 = vpop.f32.mrb[4].mxu1 }
 0x37c   : > { %v279_v30 = vmul.f32 0.25, %v273_v29  ;;  %v439_v31 = vpop.f32.mrb[5].mxu1 }
 0x37d   : > { %v276_v32 = vpop.f32.mrb[6].mxu1 }
 0x37e   : > { %v440_v33 = vpop.f32.mrb[7].mxu1  ;;  %v280_v34 = vsel %vm167_vm2, %v279_v30, -inf }
 0x37f   : > { %281 = vmax.xlane.f32.xlu1 %v280_v34 }
 0x40c   : > { %v282_v35 = vpop.xlane.xlu1 %281 }
 0x40d   : > { %v283_v36 = vsub.f32 %v279_v30, %v282_v35 }
 0x40f   : > { %v284_v37 = vmul.f32 1.442695, %v283_v36 }
 0x411   : > { %468 = vpow2.f32 %v284_v37 }
 0x41b   : > { %v469_v38 = vpop.eup %468 }
 0x41c   : > { %v286_v39 = vsel %vm167_vm2, %v469_v38, 0.0 }
 0x41d   : > { %287 = vadd.xlane.f32.xlu0 %v286_v39 }
 0x433   : > { %292 = vrot.lane.b32.xlu0 %v516_v2, %s486_s16 }
 0x4aa   : > { %v288_v40 = vpop.xlane.xlu0 %287 }
 0x4ab   : > { %470 = vrcp.f32 %v288_v40 }
 0x4ae   : > { %v293_v41 = vpop.permute.xlu0 %292 }
 0x4af   : > { %v298_v42 = vsel %vm185_vm3, %v293_v41, 0 }
 0x4b0   : > { %442 = vmatpush3.bf16.msra.mxu0 %v298_v42 }
 0x4b5   : > { %v471_v43 = vpop.eup %470 }
 0x4b6   : > { %v290_v44 = vmul.f32 %v471_v43, %v469_v38 }
 0x4b8   : > { %v291_v45 = vpack.c.bf16 %v290_v44, %v290_v44 }
 0x4ba   : > { %444 = vmatmul.mubr.msk.bf16.vlgmr.msra.gmra.mrb[4].mxu0 %vm167_vm2, %v291_v45 }
 0x58d   : > { %v334_v46 = vpop.f32.mrb[4].mxu0 }
 0x58e   : > { %341 = vrot.lane.b32.xlu0 %v334_v46, %s487_s17  ;;  %v445_v47 = vpop.f32.mrb[5].mxu0 }
 0x58f   : > { %v337_v48 = vpop.f32.mrb[6].mxu0 }
 0x590   : > { %v446_v49 = vpop.f32.mrb[7].mxu0 }
 0x600   : > { %v342_v50 = vpop.permute.xlu0 %341 }
 0x601   : > { %v344_v51 = vsel %vm119_vm1, %v223_v25, %v342_v50 }
 0x602   : > { %v345_v52 = vpack.c.bf16 %v344_v51, %v344_v51 }
 0x604   : > { %347 = vst.msk [vmem:[%s111_s20] sm:$0xf] %vm346_vm4, %v345_v52 }
 0x605 PF: > { %s11_s6 = sadd.s32 1, %s478_s6  }
 0x606   : > { %p8_p4 = scmp.ge.s32.totalorder %s11_s6, 4  }
 0x608   :  { %10 = sbr.rel (!%p8_p4) target bundleno = 1 (0x1), region = 54 }

// kernel: protbert_classifier_forward.15
= control target key start
LH: loop header
LB: loop body
LE: loop exit
PB: predicated region body
PF: predicated region fallthrough
CT: control target
= control target key end

     0   :  { %vm28_vm0 = vcmask 261120   ;;  %v220_v0 = vmov 0.0   ;;  %vm221_vm1 = vmmov 0   ;;  %vm178_vm2 = vcmask 257024   ;;  %s293_s1 = inlined_call_operand.vmem [shape: bf16[32,32], index: 1, kind: input, shape index: {}]   ;;  %s294_s0 = inlined_call_operand.vmem [shape: bf16[16,32], index: 0, kind: input, shape index: {}]   ;;  %s295_s3 = inlined_call_operand.vmem [shape: bf16[16,32], index: 3, kind: input, shape index: {}]   ;;  %s296_s2 = inlined_call_operand.vmem [shape: f32[1,32], index: 2, kind: input, shape index: {}]   ;;  %s297_s4 = inlined_call_operand.vmem [shape: f32[1,32], index: 4, kind: input, shape index: {}]   ;;  %s298_s5 = inlined_call_operand.vmem [shape: f32[1,32], index: 5, kind: input, shape index: {}]   ;;  %s299_s6 = inlined_call_operand.vmem [shape: bf16[16,32], index: 6, kind: output, shape index: {}]  }
   0x1   :  { %203 = vmatprep.subr.bf16.mxu0 %v220_v0  ;;  %v213_v1 = vld [vmem:[%s293_s1] sm:$0xff]   ;;  %207 = vmatprep.mubr.msk.bf16.mxu0 %vm221_vm1, %v220_v0  ;;  %29 = vst.msk [vmem:[#allocation2] sm:$0xff] %vm28_vm0, %v220_v0  ;;  %30 = vst.msk [vmem:[#allocation2 + $0x8] sm:$0xff] %vm28_vm0, %v220_v0  ;;  %v214_v2 = vld [vmem:[%s293_s1 + $0x8] sm:$0xff]  }
   0x2   :  { %204 = vmatpush3.bf16.msra.mxu0 %v213_v1  ;;  %v215_v3 = vld [vmem:[%s294_s0] sm:$0xff]  }
   0x3   :  { %205 = vmatprep.subr.bf16.mxu0 %v220_v0  ;;  %v197_v12 = vld [vmem:[%s295_s3] sm:$0xff]  }
   0x4   :  { %v189_v13 = vld [vmem:[%s296_s2] ss:$0 sm:$0xff]  ;;  %v198_v14 = vunpack.c.l.bf16 %v197_v12  ;;  %v199_v17 = vunpack.c.h.bf16 %v197_v12 }
   0x5   :  { %v190_v41 = vld [vmem:[%s297_s4] ss:$0 sm:$0xff] }
   0x6   :  { %206 = vmatpush3.bf16.msra.mxu0 %v214_v2  ;;  %v191_v43 = vld [vmem:[%s298_s5] ss:$0 sm:$0xff] }
   0x8   :  { %v31_v4 = vld [vmem:[#allocation2] sm:$0xff]  ;;  %v32_v6 = vld [vmem:[#allocation2 + $0x8] sm:$0xff] }
   0x9   :  { %208 = vmatmul.mubr.msk.bf16.vlgmr.msra.gmra.mrb[0].mxu0 %vm28_vm0, %v215_v3 }
  0xdc   :  { %v94_v5 = vpop.f32.mrb[0].mxu0 }
  0xdd   :  { %v101_v7 = vadd.f32 %v94_v5, %v31_v4  ;;  %v209_v8 = vpop.f32.mrb[1].mxu0 }
  0xde   :  { %v97_v9 = vpop.f32.mrb[2].mxu0 }
  0xdf   :  { %103 = vst.msk [vmem:[#allocation2] sm:$0xff] %vm28_vm0, %v101_v7  ;;  %v102_v10 = vadd.f32 %v97_v9, %v32_v6  ;;  %v210_v11 = vpop.f32.mrb[3].mxu0 }
  0xe1   :  { %104 = vst.msk [vmem:[#allocation2 + $0x8] sm:$0xff] %vm28_vm0, %v102_v10 }
  0xe6   :  { %v108_v15 = vld [vmem:[#allocation2] sm:$0xff] }
  0xe7   :  { %v117_v16 = vadd.f32 %v189_v13, %v108_v15 }
  0xe8   :  { %v109_v18 = vld [vmem:[#allocation2 + $0x8] sm:$0xff] }
  0xe9   :  { %v123_v19 = vadd.f32 %v198_v14, %v117_v16  ;;  %v118_v20 = vadd.f32 %v189_v13, %v109_v18 }
  0xeb   :  { %v125_v21 = vsel %vm28_vm0, %v123_v19, 0.0  ;;  %v124_v22 = vadd.f32 %v199_v17, %v118_v20 }
  0xec   :  { %126 = vadd.xlane.f32.xlu0 %v125_v21 }
  0xed   :  { %v128_v23 = vsel %vm28_vm0, %v124_v22, 0.0 }
  0xf0   :  { %129 = vadd.xlane.f32.xlu0 %v128_v23 }
 0x179   :  { %v127_v24 = vpop.xlane.xlu0 %126 }
 0x17a   :  { %v132_v25 = vmul.f32 0.03125, %v127_v24 }
 0x17c   :  { %v134_v26 = vsub.f32 %v123_v19, %v132_v25 }
 0x17d   :  { %v130_v27 = vpop.xlane.xlu0 %129 }
 0x17e   :  { %v133_v28 = vmul.f32 0.03125, %v130_v27  ;;  %v136_v29 = vmul.f32 %v134_v26, %v134_v26 }
 0x180   :  { %v135_v30 = vsub.f32 %v124_v22, %v133_v28  ;;  %v138_v31 = vsel %vm28_vm0, %v136_v29, 0.0 }
 0x181   :  { %139 = vadd.xlane.f32.xlu1 %v138_v31 }
 0x182   :  { %v137_v32 = vmul.f32 %v135_v30, %v135_v30 }
 0x184   :  { %v141_v33 = vsel %vm28_vm0, %v137_v32, 0.0 }
 0x185   :  { %142 = vadd.xlane.f32.xlu1 %v141_v33 }
 0x20e   :  { %v140_v34 = vpop.xlane.xlu1 %139 }
 0x20f   :  { %v144_v35 = vmul.f32 0.03125, %v140_v34 }
 0x211   :  { %v146_v36 = vadd.f32 1e-12, %v144_v35 }
 0x212   :  { %v143_v37 = vpop.xlane.xlu1 %142 }
 0x213   :  { %216 = vrsqrt.f32 %v146_v36  ;;  %v145_v38 = vmul.f32 0.03125, %v143_v37 }
 0x215   :  { %v147_v39 = vadd.f32 1e-12, %v145_v38 }
 0x217   :  { %218 = vrsqrt.f32 %v147_v39 }
 0x21d   :  { %v217_v40 = vpop.eup %216 }
 0x21e   :  { %v150_v42 = vmul.f32 %v217_v40, %v134_v26 }
 0x220   :  { %v159_v44 = vmul.f32 %v190_v41, %v150_v42 }
 0x221   :  { %v219_v45 = vpop.eup %218 }
 0x222   :  { %v168_v46 = vadd.f32 %v191_v43, %v159_v44  ;;  %v151_v47 = vmul.f32 %v219_v45, %v135_v30 }
 0x224   :  { %v194_v48 = vpack.c.bf16 %v168_v46, %v168_v46  ;;  %v160_v49 = vmul.f32 %v190_v41, %v151_v47 }
 0x226   :  { %179 = vst.msk [vmem:[%s299_s6] sm:$0xf] %vm178_vm2, %v194_v48  ;;  %v169_v50 = vadd.f32 %v191_v43, %v160_v49 }
 0x228   :  { %v195_v51 = vpack.c.bf16 %v169_v50, %v169_v50 }
 0x22a   :  { %180 = vst.msk [vmem:[%s299_s6 + $0x4] sm:$0xf] %vm178_vm2, %v195_v51 }

// kernel: protbert_classifier_forward.16
= control target key start
LH: loop header
LB: loop body
LE: loop exit
PB: predicated region body
PF: predicated region fallthrough
CT: control target
= control target key end

     0   :  { %vm19_vm0 = vcmask 523264   ;;  %v173_v0 = vmov 0.0   ;;  %vm174_vm1 = vmmov 0   ;;  %vm47_vm2 = vcmask 261120   ;;  %s217_s1 = inlined_call_operand.vmem [shape: bf16[32,64], index: 1, kind: input, shape index: {}]   ;;  %s218_s0 = inlined_call_operand.vmem [shape: bf16[16,32], index: 0, kind: input, shape index: {}]   ;;  %s219_s2 = inlined_call_operand.vmem [shape: f32[1,64], index: 2, kind: input, shape index: {}]   ;;  %s220_s3 = inlined_call_operand.vmem [shape: bf16[16,64], index: 3, kind: output, shape index: {}]  }
   0x1   :  { %156 = vmatprep.subr.bf16.mxu0 %v173_v0  ;;  %v166_v1 = vld [vmem:[%s217_s1] sm:$0xff]   ;;  %160 = vmatprep.mubr.msk.bf16.mxu0 %vm174_vm1, %v173_v0  ;;  %20 = vst.msk [vmem:[#allocation2] sm:$0xff] %vm19_vm0, %v173_v0  ;;  %21 = vst.msk [vmem:[#allocation2 + $0x8] sm:$0xff] %vm19_vm0, %v173_v0  ;;  %v167_v2 = vld [vmem:[%s217_s1 + $0x8] sm:$0xff]   ;;  %vm137_vm3 = vcmask 519168  }
   0x2   :  { %157 = vmatpush3.bf16.msra.mxu0 %v166_v1  ;;  %v168_v3 = vld [vmem:[%s218_s0] sm:$0xff]  }
   0x3   :  { %158 = vmatprep.subr.bf16.mxu0 %v173_v0  ;;  %v148_v12 = vld [vmem:[%s219_s2] ss:$0 sm:$0xff] }
   0x6   :  { %159 = vmatpush3.bf16.msra.mxu0 %v167_v2 }
   0x8   :  { %v22_v4 = vld [vmem:[#allocation2] sm:$0xff]  ;;  %v23_v6 = vld [vmem:[#allocation2 + $0x8] sm:$0xff] }
   0x9   :  { %161 = vmatmul.mubr.msk.bf16.vlgmr.msra.gmra.mrb[0].mxu0 %vm47_vm2, %v168_v3 }
  0xdc   :  { %v85_v5 = vpop.f32.mrb[0].mxu0 }
  0xdd   :  { %v92_v7 = vadd.f32 %v85_v5, %v22_v4  ;;  %v162_v8 = vpop.f32.mrb[1].mxu0 }
  0xde   :  { %v88_v9 = vpop.f32.mrb[2].mxu0 }
  0xdf   :  { %95 = vst.msk [vmem:[#allocation2] sm:$0xff] %vm19_vm0, %v92_v7  ;;  %v93_v10 = vadd.f32 %v88_v9, %v23_v6  ;;  %v163_v11 = vpop.f32.mrb[3].mxu0 }
  0xe1   :  { %96 = vst.msk [vmem:[#allocation2 + $0x8] sm:$0xff] %vm19_vm0, %v93_v10 }
  0xe6   :  { %v100_v13 = vld [vmem:[#allocation2] sm:$0xff] }
  0xe7   :  { %v109_v14 = vadd.f32 %v148_v12, %v100_v13 }
  0xe8   :  { %v101_v15 = vld [vmem:[#allocation2 + $0x8] sm:$0xff] }
  0xe9   :  { %v113_v16 = vmul.f32 0.044715, %v109_v14  ;;  %v110_v17 = vadd.f32 %v148_v12, %v101_v15  ;;  %v111_v28 = vmul.f32 0.5, %v109_v14 }
  0xeb   :  { %v115_v18 = vmul.f32 %v113_v16, %v109_v14  ;;  %v114_v19 = vmul.f32 0.044715, %v110_v17  ;;  %v112_v32 = vmul.f32 0.5, %v110_v17 }
  0xed   :  { %v117_v20 = vmul.f32 %v115_v18, %v109_v14  ;;  %v116_v21 = vmul.f32 %v114_v19, %v110_v17 }
  0xef   :  { %v119_v22 = vadd.f32 %v117_v20, %v109_v14  ;;  %v118_v23 = vmul.f32 %v116_v21, %v110_v17 }
  0xf1   :  { %v121_v24 = vmul.f32 0.7978846, %v119_v22  ;;  %v120_v25 = vadd.f32 %v118_v23, %v110_v17 }
  0xf3   :  { %169 = vtanh.f32 %v121_v24  ;;  %v122_v26 = vmul.f32 0.7978846, %v120_v25 }
  0xf5   :  { %171 = vtanh.f32 %v122_v26 }
  0xfd   :  { %v170_v27 = vpop.eup %169 }
  0xfe   :  { %v125_v29 = vadd.f32 1.0, %v170_v27 }
  0xff   :  { %v172_v30 = vpop.eup %171 }
 0x100   :  { %v127_v31 = vmul.f32 %v125_v29, %v111_v28  ;;  %v126_v33 = vadd.f32 1.0, %v172_v30 }
 0x102   :  { %v151_v34 = vpack.c.bf16 %v127_v31, %v127_v31  ;;  %v128_v35 = vmul.f32 %v126_v33, %v112_v32 }
 0x104   :  { %138 = vst.msk [vmem:[%s220_s3] sm:$0xf] %vm137_vm3, %v151_v34  ;;  %v152_v36 = vpack.c.bf16 %v128_v35, %v128_v35 }
 0x106   :  { %139 = vst.msk [vmem:[%s220_s3 + $0x4] sm:$0xf] %vm137_vm3, %v152_v36 }

// kernel: protbert_classifier_forward.23
= control target key start
LH: loop header
LB: loop body
LE: loop exit
PB: predicated region body
PF: predicated region fallthrough
CT: control target
= control target key end

     0   :  { %v158_v1 = vmov 0.0   ;;  %vm159_vm0 = vmmov 0   ;;  %vm20_vm1 = vcmask 41984   ;;  %s208_s0 = inlined_call_operand.vmem [shape: bf16[2,32], index: 0, kind: input, shape index: {}]   ;;  %s209_s1 = inlined_call_operand.vmem [shape: bf16[32,6], index: 1, kind: input, shape index: {}]   ;;  %s210_s2 = inlined_call_operand.vmem [shape: f32[1,6], index: 2, kind: input, shape index: {}]   ;;  %s211_s3 = inlined_call_operand.hbm [shape: f32[2,6], index: 3, kind: output, shape index: {}]  }
   0x1   :  { %v132_v0 = vld [vmem:[%s209_s1] sm:$0xff]   ;;  %121 = vmatprep.subr.bf16.mxu0 %v158_v1  ;;  %v133_v2 = vld [vmem:[%s209_s1 + $0x8] sm:$0xff]   ;;  %125 = vmatprep.mubr.msk.bf16.mxu0 %vm159_vm0, %v158_v1 }
   0x2   :  { %122 = vmatpush3.bf16.msra.mxu0 %v132_v0 }
   0x3   :  { %8 = vsyncpa [#allocation4], 0  ;;  %123 = vmatprep.subr.bf16.mxu0 %v158_v1  ;;  %21 = vst.msk [vmem:[#allocation2] sm:$0x3] %vm20_vm1, %v158_v1  ;;  %v23_v3 = vld [vmem:[%s208_s0] sm:$0x1] }
   0x4   :  { %vm40_vm2 = vcmask 261120   ;;  %v117_v10 = vld [vmem:[%s210_s2] ss:$0 sm:$0xff]  ;;  %s160_s19 = smov [#allocation3]  }
   0x5   :  { %s106_s20 = sshll.u32 %s160_s19, 4  ;;  %s107_s20 = int_to_ptr.vmem [resolvable:$true] %s106_s20 }
   0x6   :  { %124 = vmatpush3.bf16.msra.mxu0 %v133_v2  ;;  %s134_s0 = scalar_lea.vmem %s107_s20, 32  ;;  %p139_p1 = scmp.lt.s32.totalorder %s107_s20, %s107_s20 }
   0x7   :  { %p135_p0 = scmp.ne.s32.totalorder %s107_s20, %s134_s0  ;;  %p140_p2 = scmp.lt.s32.totalorder %s134_s0, %s134_s0 }
   0x9   :  { %126 = vmatmul.mubr.msk.bf16.vlgmr.msra.gmra.mrb[0].mxu0 %vm40_vm2, %v23_v3  ;;  %p141_p3 = por %p140_p2, %p139_p1 }
   0xa   :  { %v22_v4 = vld [vmem:[#allocation2] sm:$0x3] }
   0xb   :  { %p142_p4 = pnand %p141_p3, %p135_p0 }
  0xdc   :  { %v78_v5 = vpop.f32.mrb[0].mxu0 }
  0xdd   :  { %v84_v6 = vadd.f32 %v78_v5, %v22_v4  ;;  %v127_v7 = vpop.f32.mrb[1].mxu0 }
  0xde   :  { %v81_v8 = vpop.f32.mrb[2].mxu0 }
  0xdf   :  { %86 = vst.msk [vmem:[#allocation2] sm:$0x3] %vm20_vm1, %v84_v6  ;;  %v128_v9 = vpop.f32.mrb[3].mxu0 }
  0xe6   :  { %v90_v11 = vld [vmem:[#allocation2] sm:$0x3] }
  0xe7   :  { %v98_v12 = vadd.f32 %v117_v10, %v90_v11 }
  0xe9   :  { %99 = vst.msk [vmem:[#allocation3] sm:$0x3] %vm20_vm1, %v98_v12 }
  0xea   :  { %145 = shalt.err (!%p142_p4)
}
  0xeb   :  { %s146_s23 = scalar_lea.hbm %s211_s3, 32 }
  0xec   :  { %p147_p5 = scmp.ne.s32.totalorder %s211_s3, %s146_s23  ;;  %p150_p6 = scmp.lt.u32.totalorder %s146_s23, %s211_s3 }
  0xee   :  { %p152_p7 = pnand %p150_p6, %p147_p5 }
  0xf0   :  { %155 = shalt.err (!%p152_p7)
}
  0xf1   :  { %109 = dma.vmem_to_hbm [thread:$0]  %s107_s20, 32, %s211_s3, [#allocation4]  }
  0xf2   :  { %156 = dma.done.wait [#allocation4], 32  }
  0xf3   :  { %157 = vsyncadd [#allocation4], 4294967264 }
  0xf4   :  { %113 = vsyncpa [#allocation4], 1 }

// kernel: protbert_classifier_forward.17
= control target key start
LH: loop header
LB: loop body
LE: loop exit
PB: predicated region body
PF: predicated region fallthrough
CT: control target
= control target key end

     0   :  { %vm28_vm0 = vcmask 261120   ;;  %v247_v0 = vmov 0.0   ;;  %vm248_vm1 = vmmov 0   ;;  %vm72_vm2 = vcmask 523264   ;;  %s325_s1 = inlined_call_operand.vmem [shape: bf16[64,32], index: 1, kind: input, shape index: {}]   ;;  %s326_s0 = inlined_call_operand.vmem [shape: bf16[16,64], index: 0, kind: input, shape index: {}]   ;;  %s327_s3 = inlined_call_operand.vmem [shape: bf16[16,32], index: 3, kind: input, shape index: {}]   ;;  %s328_s2 = inlined_call_operand.vmem [shape: f32[1,32], index: 2, kind: input, shape index: {}]   ;;  %s329_s4 = inlined_call_operand.vmem [shape: f32[1,32], index: 4, kind: input, shape index: {}]   ;;  %s330_s5 = inlined_call_operand.vmem [shape: f32[1,32], index: 5, kind: input, shape index: {}]   ;;  %s331_s6 = inlined_call_operand.vmem [shape: bf16[16,32], index: 6, kind: output, shape index: {}]  }
   0x1   :  { %224 = vmatprep.subr.bf16.mxu0 %v247_v0  ;;  %v238_v1 = vld [vmem:[%s325_s1] sm:$0xff]   ;;  %232 = vmatprep.mubr.msk.bf16.mxu0 %vm248_vm1, %v247_v0  ;;  %29 = vst.msk [vmem:[#allocation2] sm:$0xff] %vm28_vm0, %v247_v0  ;;  %30 = vst.msk [vmem:[#allocation2 + $0x8] sm:$0xff] %vm28_vm0, %v247_v0  ;;  %v239_v2 = vld [vmem:[%s325_s1 + $0x8] sm:$0xff]   ;;  %vm195_vm3 = vcmask 257024  }
   0x2   :  { %225 = vmatpush3.bf16.msra.mxu0 %v238_v1  ;;  %v240_v3 = vld [vmem:[%s325_s1 + $0x10] sm:$0xff]   ;;  %v241_v4 = vld [vmem:[%s325_s1 + $0x18] sm:$0xff]   ;;  %v242_v5 = vld [vmem:[%s326_s0] sm:$0xff]  }
   0x3   :  { %226 = vmatprep.subr.bf16.mxu0 %v247_v0  ;;  %v216_v14 = vld [vmem:[%s327_s3] sm:$0xff]  }
   0x4   :  { %v208_v15 = vld [vmem:[%s328_s2] ss:$0 sm:$0xff]  ;;  %v217_v16 = vunpack.c.l.bf16 %v216_v14  ;;  %v218_v19 = vunpack.c.h.bf16 %v216_v14 }
   0x5   :  { %v209_v43 = vld [vmem:[%s329_s4] ss:$0 sm:$0xff] }
   0x6   :  { %227 = vmatpush3.bf16.msra.mxu0 %v239_v2  ;;  %v210_v45 = vld [vmem:[%s330_s5] ss:$0 sm:$0xff] }
   0x7   :  { %228 = vmatprep.subr.bf16.mxu0 %v247_v0 }
   0x8   :  { %v31_v6 = vld [vmem:[#allocation2] sm:$0xff]  ;;  %v32_v8 = vld [vmem:[#allocation2 + $0x8] sm:$0xff] }
   0xa   :  { %229 = vmatpush3.bf16.msra.mxu0 %v240_v3 }
   0xb   :  { %230 = vmatprep.subr.bf16.mxu0 %v247_v0 }
   0xe   :  { %231 = vmatpush3.bf16.msra.mxu0 %v241_v4 }
  0x11   :  { %233 = vmatmul.mubr.msk.bf16.vlgmr.msra.gmra.mrb[0].mxu0 %vm72_vm2, %v242_v5 }
  0xe4   :  { %v110_v7 = vpop.f32.mrb[0].mxu0 }
  0xe5   :  { %v117_v9 = vadd.f32 %v110_v7, %v31_v6  ;;  %v234_v10 = vpop.f32.mrb[1].mxu0 }
  0xe6   :  { %v113_v11 = vpop.f32.mrb[2].mxu0 }
  0xe7   :  { %120 = vst.msk [vmem:[#allocation2] sm:$0xff] %vm28_vm0, %v117_v9  ;;  %v118_v12 = vadd.f32 %v113_v11, %v32_v8  ;;  %v235_v13 = vpop.f32.mrb[3].mxu0 }
  0xe9   :  { %121 = vst.msk [vmem:[#allocation2 + $0x8] sm:$0xff] %vm28_vm0, %v118_v12 }
  0xee   :  { %v125_v17 = vld [vmem:[#allocation2] sm:$0xff] }
  0xef   :  { %v134_v18 = vadd.f32 %v208_v15, %v125_v17 }
  0xf0   :  { %v126_v20 = vld [vmem:[#allocation2 + $0x8] sm:$0xff] }
  0xf1   :  { %v140_v21 = vadd.f32 %v217_v16, %v134_v18  ;;  %v135_v22 = vadd.f32 %v208_v15, %v126_v20 }
  0xf3   :  { %v142_v23 = vsel %vm28_vm0, %v140_v21, 0.0  ;;  %v141_v24 = vadd.f32 %v218_v19, %v135_v22 }
  0xf4   :  { %143 = vadd.xlane.f32.xlu0 %v142_v23 }
  0xf5   :  { %v145_v25 = vsel %vm28_vm0, %v141_v24, 0.0 }
  0xf8   :  { %146 = vadd.xlane.f32.xlu0 %v145_v25 }
 0x181   :  { %v144_v26 = vpop.xlane.xlu0 %143 }
 0x182   :  { %v149_v27 = vmul.f32 0.03125, %v144_v26 }
 0x184   :  { %v151_v28 = vsub.f32 %v140_v21, %v149_v27 }
 0x185   :  { %v147_v29 = vpop.xlane.xlu0 %146 }
 0x186   :  { %v150_v30 = vmul.f32 0.03125, %v147_v29  ;;  %v153_v31 = vmul.f32 %v151_v28, %v151_v28 }
 0x188   :  { %v152_v32 = vsub.f32 %v141_v24, %v150_v30  ;;  %v155_v33 = vsel %vm28_vm0, %v153_v31, 0.0 }
 0x189   :  { %156 = vadd.xlane.f32.xlu1 %v155_v33 }
 0x18a   :  { %v154_v34 = vmul.f32 %v152_v32, %v152_v32 }
 0x18c   :  { %v158_v35 = vsel %vm28_vm0, %v154_v34, 0.0 }
 0x18d   :  { %159 = vadd.xlane.f32.xlu1 %v158_v35 }
 0x216   :  { %v157_v36 = vpop.xlane.xlu1 %156 }
 0x217   :  { %v161_v37 = vmul.f32 0.03125, %v157_v36 }
 0x219   :  { %v163_v38 = vadd.f32 1e-12, %v161_v37 }
 0x21a   :  { %v160_v39 = vpop.xlane.xlu1 %159 }
 0x21b   :  { %243 = vrsqrt.f32 %v163_v38  ;;  %v162_v40 = vmul.f32 0.03125, %v160_v39 }
 0x21d   :  { %v164_v41 = vadd.f32 1e-12, %v162_v40 }
 0x21f   :  { %245 = vrsqrt.f32 %v164_v41 }
 0x225   :  { %v244_v42 = vpop.eup %243 }
 0x226   :  { %v167_v44 = vmul.f32 %v244_v42, %v151_v28 }
 0x228   :  { %v176_v46 = vmul.f32 %v209_v43, %v167_v44 }
 0x229   :  { %v246_v47 = vpop.eup %245 }
 0x22a   :  { %v185_v48 = vadd.f32 %v210_v45, %v176_v46  ;;  %v168_v49 = vmul.f32 %v246_v47, %v152_v32 }
 0x22c   :  { %v213_v50 = vpack.c.bf16 %v185_v48, %v185_v48  ;;  %v177_v51 = vmul.f32 %v209_v43, %v168_v49 }
 0x22e   :  { %196 = vst.msk [vmem:[%s331_s6] sm:$0xf] %vm195_vm3, %v213_v50  ;;  %v186_v52 = vadd.f32 %v210_v45, %v177_v51 }
 0x230   :  { %v214_v53 = vpack.c.bf16 %v186_v52, %v186_v52 }
 0x232   :  { %197 = vst.msk [vmem:[%s331_s6 + $0x4] sm:$0xf] %vm195_vm3, %v214_v53 }

</bundles_post_ra>
